<compile_context>
chip_gen: v7x
topology: tpu7x:2x2x1
jax: 0.10.0
libtpu: 0.0.40
codegen_flags: <defaults>
</compile_context>

<pallas_src>
import numpy as np
import jax
import jax.numpy as jnp
from jax import lax
from jax.experimental import pallas as pl
from jax.experimental.pallas import tpu as pltpu  # noqa: F401  (TPU backend)


# ----------------------------------------------------------------------------
# The fused Pallas kernel
# ----------------------------------------------------------------------------
def _encoder_kernel(p1_ref, w1_ref, s2_ref, w2_ref, lcomb_ref, wfc_ref, o_ref):
    f32 = jnp.float32

    # ---- conv1 (im2col matmul, bias folded via ones column) + ELU ----------
    h1 = jnp.dot(p1_ref[...], w1_ref[...], preferred_element_type=f32)  # (K1, 33)
    # min-guard keeps exp() finite on the unselected branch; ones column (=1)
    # passes through ELU unchanged.
    h1 = jnp.where(h1 > 0.0, h1, jnp.exp(jnp.minimum(h1, 0.0)) - 1.0)

    # ---- conv2: one wide row-gather matmul (stride-2 + padding selection of
    #      h1 rows for all 9 taps at once), then one batched per-tap matmul
    #      accumulated with an outer-dim sum.  b2 rides on the always-valid
    #      centre tap via the ones column. -----------------------------------
    n_taps, kc1, _oc2 = w2_ref.shape                      # (9, 33, 33)
    sel = s2_ref[...].astype(f32)                         # (9*M2, K1) 0/1
    g = jnp.dot(sel, h1, preferred_element_type=f32)      # (9*M2, 33)
    g3 = g.reshape(n_taps, -1, kc1)                       # (9, M2, 33) free reshape
    acc2 = jnp.einsum("tmk,tkn->tmn", g3, w2_ref[...],
                      preferred_element_type=f32).sum(axis=0)   # (M2, 33)

    # ---- fc1: batched over the 16 spatial positions (M=32, N=288 lane-dense
    #      matmuls), merge leading dims (free, no lane crossing), then one
    #      combined selection matmul realising PyTorch's NCHW .view(B, -1)
    #      flatten + row pick.  b_fc rides on s == 0 via the ones column. -----
    n_sp = wfc_ref.shape[0]                               # 16
    m2 = acc2.shape[0]                                    # B * 16
    acc2_b = jnp.broadcast_to(acc2[None], (n_sp, m2, acc2.shape[1]))
    gs = jnp.einsum("smk,skf->smf", acc2_b, wfc_ref[...],
                    preferred_element_type=f32)           # (16, M2, F)
    stacked = gs.reshape(n_sp * m2, -1)                   # (16*M2, F) free reshape
    feat = jnp.dot(lcomb_ref[...].astype(f32), stacked,
                   preferred_element_type=f32)            # (B, F)
    o_ref[...] = feat.astype(o_ref.dtype)


# ----------------------------------------------------------------------------
# Host-side glue (trace time): conv1 im2col and the constant 0/1 selections
# ----------------------------------------------------------------------------
def _im2col_3x3_s2_p1(x_nchw):
    """(B, C, H, W) -> patches (B*OH*OW, 9*C + 1); cols ordered (kh, kw, c),
    with a trailing ones column for the folded conv1 bias."""
    B, C, H, W = x_nchw.shape
    OH, OW = (H + 2 - 3) // 2 + 1, (W + 2 - 3) // 2 + 1
    xp = jnp.pad(x_nchw, ((0, 0), (0, 0), (1, 1), (1, 1)))
    taps = [xp[:, :, i:i + 2 * OH:2, j:j + 2 * OW:2]
            for i in range(3) for j in range(3)]
    cols = jnp.stack(taps, axis=2)                # (B, C, 9, OH, OW)
    cols = cols.transpose(0, 3, 4, 2, 1)          # (B, OH, OW, 9, C)
    pat = cols.reshape(B * OH * OW, 9 * C)
    ones = jnp.ones((pat.shape[0], 1), pat.dtype)
    return jnp.concatenate([pat, ones], axis=1), OH, OW


def _conv2_tap_select(B, H1, W1):
    """Stacked 0/1 matrix S: (9*B*OH2*OW2, B*H1*W1).  Row t*M2 + m selects the
    h1 row feeding tap t of a 3x3 / stride-2 / pad-1 conv at output position m
    (all-zero rows encode padding)."""
    OH2, OW2 = (H1 + 2 - 3) // 2 + 1, (W1 + 2 - 3) // 2 + 1
    M2 = B * OH2 * OW2
    S = np.zeros((9 * M2, B * H1 * W1), np.float32)
    for di in range(3):
        for dj in range(3):
            t = di * 3 + dj
            for b in range(B):
                for oh in range(OH2):
                    for ow in range(OW2):
                        h, w = 2 * oh + di - 1, 2 * ow + dj - 1
                        if 0 <= h < H1 and 0 <= w < W1:
                            S[t * M2 + b * OH2 * OW2 + oh * OW2 + ow,
                              b * H1 * W1 + h * W1 + w] = 1.0
    return S, OH2, OW2


def _fc_combine_select(B, S2, M2):
    """0/1 matrix L: (B, S2*M2).  Picks row (s, b*S2+s) of the stacked fc
    partials for every spatial position s and sums them -> the final flatten."""
    L = np.zeros((B, S2 * M2), np.float32)
    for b in range(B):
        for s in range(S2):
            L[b, s * M2 + b * S2 + s] = 1.0
    return L


def prepare_params(params):
    """One-time fold of all layout permutations AND all biases into the
    weight matrices (free, host-side)."""
    w1 = np.asarray(params["w1"], np.float32)     # (OC1, C, 3, 3)
    b1 = np.asarray(params["b1"], np.float32)     # (OC1,)
    w2 = np.asarray(params["w2"], np.float32)     # (OC2, OC1, 3, 3)
    b2 = np.asarray(params["b2"], np.float32)     # (OC2,)
    w_fc = np.asarray(params["w_fc"], np.float32)  # (OC2*S2, F)
    b_fc = np.asarray(params["b_fc"], np.float32)  # (F,)

    OC1, C = w1.shape[0], w1.shape[1]
    OC2 = w2.shape[0]
    F = w_fc.shape[1]
    S2 = w_fc.shape[0] // OC2                      # conv2 output spatial size

    # conv1: (9C+1, OC1+1); rows ordered (kh, kw, c) + bias row; the last
    # column produces the ones column of h1 (row 9C entry = 1).
    w1_mat = w1.transpose(2, 3, 1, 0).reshape(9 * C, OC1)
    w1_aug = np.zeros((9 * C + 1, OC1 + 1), np.float32)
    w1_aug[:9 * C, :OC1] = w1_mat
    w1_aug[9 * C, :OC1] = b1
    w1_aug[9 * C, OC1] = 1.0

    # conv2: (9, OC1+1, OC2+1) per-tap weights; b2 + ones-column propagation
    # only on the centre tap (kh=kw=1), which is always in-range for s2/p1.
    w2_taps = w2.transpose(2, 3, 1, 0).reshape(9, OC1, OC2)
    w2_aug = np.zeros((9, OC1 + 1, OC2 + 1), np.float32)
    w2_aug[:, :OC1, :OC2] = w2_taps
    center = 4                                     # tap (kh, kw) = (1, 1)
    w2_aug[center, OC1, :OC2] = b2
    w2_aug[center, OC1, OC2] = 1.0

    # fc: (S2, OC2+1, F); PyTorch's NCHW .view(B,-1) permutation folded into
    # the per-spatial-position slabs; b_fc rides on s == 0.
    wfc = w_fc.reshape(OC2, S2, F).transpose(1, 0, 2)
    wfc_aug = np.zeros((S2, OC2 + 1, F), np.float32)
    wfc_aug[:, :OC2, :] = wfc
    wfc_aug[0, OC2, :] = b_fc

    return {"w1": jnp.asarray(w1_aug),
            "w2": jnp.asarray(w2_aug),
            "w_fc": jnp.asarray(wfc_aug)}


@jax.jit
def encoder_forward(kparams, img):
    """img: (B, C, H, W) NCHW; kparams from prepare_params().  Whole encoder
    forward runs inside one fused Pallas kernel."""
    B = img.shape[0]
    patches1, OH1, OW1 = _im2col_3x3_s2_p1(img)             # (K1, 9C+1)
    s2, OH2, OW2 = _conv2_tap_select(B, OH1, OW1)           # trace-time const
    S2 = OH2 * OW2
    M2 = B * S2
    lcomb = _fc_combine_select(B, S2, M2)                   # trace-time const

    kc1, oc1 = kparams["w1"].shape                          # (9C+1, 33)
    oc2 = kparams["w2"].shape[2]                            # 33
    F = kparams["w_fc"].shape[2]                            # 288
    K1 = B * OH1 * OW1                                      # 128

    flops = 2 * (K1 * kc1 * oc1                 # conv1
                 + 9 * M2 * K1 * oc1            # conv2 gather
                 + 9 * M2 * oc1 * oc2           # conv2 per-tap
                 + S2 * M2 * oc2 * F            # fc batched
                 + B * S2 * M2 * F)             # fc combine
    bytes_accessed = int(patches1.size * 4 + kparams["w1"].size * 4
                         + s2.size * 2 + kparams["w2"].size * 4
                         + lcomb.size * 2 + kparams["w_fc"].size * 4
                         + B * F * 4)
    cost = pl.CostEstimate(flops=int(flops),
                           transcendentals=int(K1 * oc1),
                           bytes_accessed=bytes_accessed)

    return pl.pallas_call(
        _encoder_kernel,
        out_shape=jax.ShapeDtypeStruct((B, F), jnp.float32),
        cost_estimate=cost,
    )(patches1.astype(jnp.float32),
      kparams["w1"],
      jnp.asarray(s2, dtype=jnp.bfloat16),        # 0/1: exact in bf16
      kparams["w2"],
      jnp.asarray(lcomb, dtype=jnp.bfloat16),     # 0/1: exact in bf16
      kparams["w_fc"])


# ----------------------------------------------------------------------------
# Pure-JAX reference (correctness check for the Pallas path)
# ----------------------------------------------------------------------------
def encoder_reference(params, img):
    dn = ("NCHW", "OIHW", "NCHW")

    def conv(x, w, b):
        y = lax.conv_general_dilated(x, w, window_strides=(2, 2),
                                     padding=((1, 1), (1, 1)),
                                     dimension_numbers=dn)
        return y + b.reshape(1, -1, 1, 1)

    enc = conv(img, params["w1"], params["b1"])
    enc = jnp.where(enc > 0, enc, jnp.exp(enc) - 1.0)        # ELU, alpha=1
    enc = conv(enc, params["w2"], params["b2"])
    enc_flat = enc.reshape(enc.shape[0], -1)                 # NCHW .view(B, -1)
    return enc_flat @ params["w_fc"] + params["b_fc"]


if __name__ == "__main__":
    # Shapes consistent with the module: input_dims = (4, 16, 16), batch = 2.
    B, C, H, W = 2, 4, 16, 16
    feature_dim = 288
    flat_dim = 32 * (H // 4) * (W // 4)                      # conv2 flat = 512

    key = jax.random.PRNGKey(0)
    k_img, k1, k2, k3, k4, k5, k6 = jax.random.split(key, 7)

    img = jax.random.normal(k_img, (B, C, H, W), dtype=jnp.float32)
    params = {
        "w1": jax.random.normal(k1, (32, C, 3, 3), dtype=jnp.float32) * 0.1,
        "b1": jax.random.normal(k2, (32,), dtype=jnp.float32) * 0.1,
        "w2": jax.random.normal(k3, (32, 32, 3, 3), dtype=jnp.float32) * 0.05,
        "b2": jax.random.normal(k4, (32,), dtype=jnp.float32) * 0.1,
        "w_fc": jax.random.normal(k5, (flat_dim, feature_dim), dtype=jnp.float32) * 0.02,
        "b_fc": jax.random.normal(k6, (feature_dim,), dtype=jnp.float32) * 0.1,
    }

    kparams = prepare_params(params)                         # one-time weight prep
    feats = jax.block_until_ready(encoder_forward(kparams, img))
    assert feats.shape == (B, feature_dim), feats.shape

    ref = jax.block_until_ready(encoder_reference(params, img))
    err = float(jnp.max(jnp.abs(feats - ref)))
    assert err < 1e-3, f"max abs error vs reference: {err}"

    print("KERNEL_OK")
</pallas_src>

<mosaic_0001>
module attributes {stable_mosaic.version = 11 : i64} {
  func.func @_encoder_kernel(%arg0: memref<128x37xf32, #tpu.memory_space<vmem>>, %arg1: memref<37x33xf32, #tpu.memory_space<vmem>>, %arg2: memref<288x128xbf16, #tpu.memory_space<vmem>>, %arg3: memref<9x33x33xf32, #tpu.memory_space<vmem>>, %arg4: memref<2x512xbf16, #tpu.memory_space<vmem>>, %arg5: memref<16x33x288xf32, #tpu.memory_space<vmem>>, %arg6: memref<2x288xf32, #tpu.memory_space<vmem>>) attributes {dimension_semantics = [], scalar_prefetch = 0 : i64, scratch_operands = 0 : i64, tpu.core_type = #tpu.core_type<tc>} {
    %c0 = arith.constant 0 : index
    %c0_0 = arith.constant 0 : index
    %0 = vector.load %arg0[%c0, %c0_0] : memref<128x37xf32, #tpu.memory_space<vmem>>, vector<128x37xf32>
    %c0_1 = arith.constant 0 : index
    %c0_2 = arith.constant 0 : index
    %1 = vector.load %arg1[%c0_1, %c0_2] : memref<37x33xf32, #tpu.memory_space<vmem>>, vector<37x33xf32>
    %cst = arith.constant dense<0.000000e+00> : vector<128x33xf32>
    %2 = tpu.matmul %0, %1, %cst {dimension_numbers = #tpu.dot_dimension_numbers<[1], [0], [0], [1], [0, 0, 1, 1], [], []>} : vector<128x37xf32>, vector<37x33xf32>, vector<128x33xf32> -> vector<128x33xf32>
    %cst_3 = arith.constant 0.000000e+00 : f32
    %3 = vector.broadcast %cst_3 : f32 to vector<128x33xf32>
    %4 = arith.cmpf ogt, %2, %3 : vector<128x33xf32>
    %cst_4 = arith.constant 0.000000e+00 : f32
    %5 = vector.broadcast %cst_4 : f32 to vector<128x33xf32>
    %6 = arith.minimumf %2, %5 : vector<128x33xf32>
    %7 = math.exp %6 : vector<128x33xf32>
    %cst_5 = arith.constant 1.000000e+00 : f32
    %8 = vector.broadcast %cst_5 : f32 to vector<128x33xf32>
    %9 = arith.subf %7, %8 : vector<128x33xf32>
    %10 = arith.select %4, %2, %9 : vector<128x33xi1>, vector<128x33xf32>
    %c0_6 = arith.constant 0 : index
    %c0_7 = arith.constant 0 : index
    %11 = vector.load %arg2[%c0_6, %c0_7] : memref<288x128xbf16, #tpu.memory_space<vmem>>, vector<288x128xbf16>
    %12 = arith.extf %11 : vector<288x128xbf16> to vector<288x128xf32>
    %cst_8 = arith.constant dense<0.000000e+00> : vector<288x33xf32>
    %13 = tpu.matmul %12, %10, %cst_8 {dimension_numbers = #tpu.dot_dimension_numbers<[1], [0], [0], [1], [0, 0, 1, 1], [], []>} : vector<288x128xf32>, vector<128x33xf32>, vector<288x33xf32> -> vector<288x33xf32>
    %14 = vector.shape_cast %13 : vector<288x33xf32> to vector<9x32x33xf32>
    %c0_9 = arith.constant 0 : index
    %c0_10 = arith.constant 0 : index
    %c0_11 = arith.constant 0 : index
    %15 = vector.load %arg3[%c0_9, %c0_10, %c0_11] : memref<9x33x33xf32, #tpu.memory_space<vmem>>, vector<9x33x33xf32>
    "tpu.trace_start"() <{level = 10 : i32, message = "tmk,tkn->tmn"}> : () -> ()
    %cst_12 = arith.constant dense<0.000000e+00> : vector<9x32x33xf32>
    %16 = tpu.matmul %14, %15, %cst_12 {dimension_numbers = #tpu.dot_dimension_numbers<[2], [1], [1], [2], [0, 0, 0, 1, 1, 2], [0], [0]>} : vector<9x32x33xf32>, vector<9x33x33xf32>, vector<9x32x33xf32> -> vector<9x32x33xf32>
    "tpu.trace_stop"() : () -> ()
    %cst_13 = arith.constant dense<0.000000e+00> : vector<32x33xf32>
    %17 = vector.multi_reduction <add>, %16, %cst_13 [0] : vector<9x32x33xf32> to vector<32x33xf32>
    %18 = vector.shape_cast %17 : vector<32x33xf32> to vector<1x32x33xf32>
    %19 = vector.shape_cast %18 : vector<1x32x33xf32> to vector<1x32x33xf32>
    %20 = vector.broadcast %19 : vector<1x32x33xf32> to vector<16x32x33xf32>
    %c0_14 = arith.constant 0 : index
    %c0_15 = arith.constant 0 : index
    %c0_16 = arith.constant 0 : index
    %21 = vector.load %arg5[%c0_14, %c0_15, %c0_16] : memref<16x33x288xf32, #tpu.memory_space<vmem>>, vector<16x33x288xf32>
    "tpu.trace_start"() <{level = 10 : i32, message = "smk,skf->smf"}> : () -> ()
    %cst_17 = arith.constant dense<0.000000e+00> : vector<16x32x288xf32>
    %22 = tpu.matmul %20, %21, %cst_17 {dimension_numbers = #tpu.dot_dimension_numbers<[2], [1], [1], [2], [0, 0, 0, 1, 1, 2], [0], [0]>} : vector<16x32x33xf32>, vector<16x33x288xf32>, vector<16x32x288xf32> -> vector<16x32x288xf32>
    "tpu.trace_stop"() : () -> ()
    %23 = vector.shape_cast %22 : vector<16x32x288xf32> to vector<512x288xf32>
    %c0_18 = arith.constant 0 : index
    %c0_19 = arith.constant 0 : index
    %24 = vector.load %arg4[%c0_18, %c0_19] : memref<2x512xbf16, #tpu.memory_space<vmem>>, vector<2x512xbf16>
    %25 = arith.extf %24 : vector<2x512xbf16> to vector<2x512xf32>
    %cst_20 = arith.constant dense<0.000000e+00> : vector<2x288xf32>
    %26 = tpu.matmul %25, %23, %cst_20 {dimension_numbers = #tpu.dot_dimension_numbers<[1], [0], [0], [1], [0, 0, 1, 1], [], []>} : vector<2x512xf32>, vector<512x288xf32>, vector<2x288xf32> -> vector<2x288xf32>
    %c0_21 = arith.constant 0 : index
    %c0_22 = arith.constant 0 : index
    %27 = vector.load %arg6[%c0_21, %c0_22] : memref<2x288xf32, #tpu.memory_space<vmem>>, vector<2x288xf32>
    tpu.vector_store %arg6[%c0_21, %c0_22], %26 {strides = array<i32>} : memref<2x288xf32, #tpu.memory_space<vmem>>, vector<2x288xf32>,
    return
  }
}

</mosaic_0001>

<bundles_post_ra>
// kernel: encoder_forward.1
= control target key start
LH: loop header
LB: loop body
LE: loop exit
PB: predicated region body
PF: predicated region fallthrough
CT: control target
= control target key end

     0   :  { %vm45_vm0 = vcmask 302080   ;;  %vm94_vm1 = vcmask 1044480   ;;  %s8869_s0 = inlined_call_operand.vmem [shape: f32[128,37], index: 0, kind: input, shape index: {}]   ;;  %s8870_s1 = inlined_call_operand.vmem [shape: f32[37,33], index: 1, kind: input, shape index: {}]   ;;  %s8871_s2 = inlined_call_operand.vmem [shape: bf16[288,128], index: 2, kind: input, shape index: {}]   ;;  %s8872_s3 = inlined_call_operand.vmem [shape: f32[9,33,33], index: 3, kind: input, shape index: {}]   ;;  %s8873_s4 = inlined_call_operand.vmem [shape: bf16[2,512], index: 4, kind: input, shape index: {}]   ;;  %s8874_s5 = inlined_call_operand.vmem [shape: f32[16,33,288], index: 5, kind: input, shape index: {}]   ;;  %s8875_s6 = inlined_call_operand.hbm [shape: f32[2,288], index: 6, kind: output, shape index: {}]  }
   0x1   :  { %v40_v0 = vld [vmem:[%s8870_s1] sm:$0xff]  ;;  %v41_v1 = vld [vmem:[%s8870_s1 + $0x8] sm:$0xff]  ;;  %v42_v2 = vld [vmem:[%s8870_s1 + $0x10] sm:$0xff] }
   0x2   :  { %v6428_v3 = vpack.c.bf16 %v41_v1, %v40_v0  ;;  %v43_v4 = vld [vmem:[%s8870_s1 + $0x18] sm:$0xff]  ;;  %v24_v5 = vld [vmem:[%s8869_s0] sm:$0xff] }
   0x3   :  { %v6432_v6 = vpack.c.bf16 %v43_v4, %v42_v2  ;;  %5918 = vmatprep.mubr.msk.f32.mxu0 %vm45_vm0, %v24_v5  ;;  %v44_v7 = vld [vmem:[%s8870_s1 + $0x20] sm:$0x1f] }
   0x4   :  { %6429 = vmatprep.subr.bf16.mxu0 %v6428_v3 }
   0x5   :  { %6431 = vmatpush3.bf16.msra.mxu0 %v6428_v3 }
   0x6   :  { %6433 = vmatprep.subr.bf16.mxu0 %v6432_v6 }
   0x7   :  { %11 = vsyncpa [#allocation3], 0  ;;  %v25_v8 = vld [vmem:[%s8869_s0 + $0x8] sm:$0xff]  ;;  %v26_v9 = vld [vmem:[%s8869_s0 + $0x10] sm:$0xff] }
   0x8   :  { %v27_v10 = vld [vmem:[%s8869_s0 + $0x18] sm:$0xff]  ;;  %v28_v11 = vld [vmem:[%s8869_s0 + $0x20] sm:$0xff]  ;;  %v29_v12 = vld [vmem:[%s8869_s0 + $0x28] sm:$0xff] }
   0x9   :  { %6435 = vmatpush3.bf16.msra.mxu0 %v6432_v6  ;;  %v30_v13 = vld [vmem:[%s8869_s0 + $0x30] sm:$0xff]  ;;  %v31_v14 = vld [vmem:[%s8869_s0 + $0x38] sm:$0xff]  ;;  %v32_v15 = vld [vmem:[%s8869_s0 + $0x40] sm:$0xff] }
   0xa   :  { %5916 = vmatprep.subr.msk.mxu0 %vm94_vm1, %v44_v7  ;;  %v33_v16 = vld [vmem:[%s8869_s0 + $0x48] sm:$0xff]  ;;  %v34_v17 = vld [vmem:[%s8869_s0 + $0x50] sm:$0xff]  ;;  %v35_v18 = vld [vmem:[%s8869_s0 + $0x58] sm:$0xff] }
   0xb   :  { %v36_v19 = vld [vmem:[%s8869_s0 + $0x60] sm:$0xff]  ;;  %v37_v20 = vld [vmem:[%s8869_s0 + $0x68] sm:$0xff]  ;;  %v38_v21 = vld [vmem:[%s8869_s0 + $0x70] sm:$0xff] }
   0xc   :  { %v39_v22 = vld [vmem:[%s8869_s0 + $0x78] sm:$0xff]  ;;  %v7185_v23 = vld [vmem:[%s8871_s2] sm:$0xff]  }
   0xd   :  { %5917 = vmatpush3.msk.msra.mxu0 %vm94_vm1, %v44_v7  ;;  %v5453_v24 = vunpack.c.l.bf16 %v7185_v23  ;;  %v7191_v25 = vld [vmem:[%s8871_s2 + $0x38] sm:$0xff]  }
   0xe   :  { %5919 = vmatmul.mubr.msk.f32.vlgmr.msra.gmra.mrb[0].mxu0 %vm45_vm0, %v25_v8  ;;  %v5481_v26 = vunpack.c.l.bf16 %v7191_v25 }
   0xf   :  { %5921 = vmatprep.mubr.msk.f32.mxu0 %vm45_vm0, %v26_v9 }
  0x10   :  { %5995 = vmatprep.mubr.f32.mxu1 %v5481_v26 }
  0x12   :  { %5922 = vmatmul.mubr.msk.f32.gmra.mrb[2].mxu0 %vm45_vm0, %v27_v10 }
  0x13   :  { %5924 = vmatprep.mubr.msk.f32.mxu0 %vm45_vm0, %v28_v11 }
  0x16   :  { %5925 = vmatmul.mubr.msk.f32.gmra.mrb[4].mxu0 %vm45_vm0, %v29_v12 }
  0x17   :  { %5927 = vmatprep.mubr.msk.f32.mxu0 %vm45_vm0, %v30_v13 }
  0x1a   :  { %5928 = vmatmul.mubr.msk.f32.gmra.mrb[6].mxu0 %vm45_vm0, %v31_v14 }
  0x1b   :  { %5930 = vmatprep.mubr.msk.f32.mxu0 %vm45_vm0, %v32_v15 }
  0x1e   :  { %5931 = vmatmul.mubr.msk.f32.gmra.mrb[8].mxu0 %vm45_vm0, %v33_v16 }
  0x1f   :  { %5933 = vmatprep.mubr.msk.f32.mxu0 %vm45_vm0, %v34_v17 }
  0x22   :  { %5934 = vmatmul.mubr.msk.f32.gmra.mrb[10].mxu0 %vm45_vm0, %v35_v18 }
  0x23   :  { %5936 = vmatprep.mubr.msk.f32.mxu0 %vm45_vm0, %v36_v19 }
  0x26   :  { %5937 = vmatmul.mubr.msk.f32.gmra.mrb[12].mxu0 %vm45_vm0, %v37_v20 }
  0x27   :  { %5939 = vmatprep.mubr.msk.f32.mxu0 %vm45_vm0, %v38_v21 }
  0x2a   :  { %5940 = vmatmul.mubr.msk.f32.gmra.mrb[14].mxu0 %vm45_vm0, %v39_v22 }
  0x2b   :  { %5974 = vmatprep.mubr.f32.mxu0 %v5453_v24 }
  0xe1   :  { %v5920_v27 = vpop.f32.mrb[0].mxu0 }
  0xe2   :  { %v260_v28 = vmin.f32 %v5920_v27, 0.0  ;;  %v164_v29 = vpop.f32.mrb[1].mxu0  ;;  %vm244_vm2 = vcmp.gt.f32.partialorder %v5920_v27, 0.0 }
  0xe3   :  { %v259_v30 = vmin.f32 %v164_v29, 0.0  ;;  %vm243_vm3 = vcmp.gt.f32.partialorder %v164_v29, 0.0 }
  0xe4   :  { %v277_v31 = vmul.f32 1.442695, %v260_v28 }
  0xe5   :  { %v275_v32 = vmul.f32 1.442695, %v259_v30  ;;  %v5923_v33 = vpop.f32.mrb[2].mxu0 }
  0xe6   :  { %7009 = vpow2.f32 %v277_v31  ;;  %v262_v34 = vmin.f32 %v5923_v33, 0.0  ;;  %v174_v35 = vpop.f32.mrb[3].mxu0  ;;  %vm246_vm4 = vcmp.gt.f32.partialorder %v5923_v33, 0.0 }
  0xe7   :  { %7011 = vpow2.f32 %v275_v32  ;;  %v261_v36 = vmin.f32 %v174_v35, 0.0  ;;  %vm245_vm5 = vcmp.gt.f32.partialorder %v174_v35, 0.0 }
  0xe8   :  { %v281_v37 = vmul.f32 1.442695, %v262_v34 }
  0xe9   :  { %v279_v38 = vmul.f32 1.442695, %v261_v36  ;;  %v7194_v39 = vpop.f32.mrb[4].mxu0 }
  0xea   :  { %7013 = vpow2.f32 %v281_v37  ;;  %v264_v40 = vmin.f32 %v7194_v39, 0.0  ;;  %v7197_v41 = vpop.f32.mrb[5].mxu0  ;;  %vm248_vm6 = vcmp.gt.f32.partialorder %v7194_v39, 0.0 }
  0xeb   :  { %7015 = vpow2.f32 %v279_v38  ;;  %v263_v42 = vmin.f32 %v7197_v41, 0.0  ;;  %vm247_vm7 = vcmp.gt.f32.partialorder %v7197_v41, 0.0 }
  0xec   :  { %v285_v43 = vmul.f32 1.442695, %v264_v40 }
  0xed   :  { %v283_v44 = vmul.f32 1.442695, %v263_v42  ;;  %v7200_v45 = vpop.f32.mrb[6].mxu0 }
  0xee   :  { %7017 = vpow2.f32 %v285_v43  ;;  %v266_v46 = vmin.f32 %v7200_v45, 0.0  ;;  %v7203_v47 = vpop.f32.mrb[7].mxu0  ;;  %vm250_vm8 = vcmp.gt.f32.partialorder %v7200_v45, 0.0 }
  0xef   :  { %7019 = vpow2.f32 %v283_v44  ;;  %v265_v48 = vmin.f32 %v7203_v47, 0.0  ;;  %vm249_vm9 = vcmp.gt.f32.partialorder %v7203_v47, 0.0 }
  0xf0   :  { %v7010_v49 = vpop.eup %7009  ;;  %v289_v50 = vmul.f32 1.442695, %v266_v46 }
  0xf1   :  { %v7012_v51 = vpop.eup %7011  ;;  %v5215_v52 = vadd.f32 -1.0, %v7010_v49  ;;  %v287_v53 = vmul.f32 1.442695, %v265_v48  ;;  %v7206_v54 = vpop.f32.mrb[8].mxu0 }
  0xf2   :  { %v5214_v55 = vadd.f32 -1.0, %v7012_v51  ;;  %7021 = vpow2.f32 %v289_v50  ;;  %v268_v56 = vmin.f32 %v7206_v54, 0.0  ;;  %v7209_v57 = vpop.f32.mrb[9].mxu0  ;;  %vm252_vm10 = vcmp.gt.f32.partialorder %v7206_v54, 0.0 }
  0xf3   :  { %v324_v58 = vsel %vm244_vm2, %v5920_v27, %v5215_v52  ;;  %7023 = vpow2.f32 %v287_v53  ;;  %v267_v59 = vmin.f32 %v7209_v57, 0.0  ;;  %vm251_vm11 = vcmp.gt.f32.partialorder %v7209_v57, 0.0 }
  0xf4   :  { %v7014_v60 = vpop.eup %7013  ;;  %v323_v61 = vsel %vm243_vm3, %v164_v29, %v5214_v55  ;;  %v293_v62 = vmul.f32 1.442695, %v268_v56  ;;  %vm714_vm2 = vcmask 1040384   ;;  %vm701_vm3 = vcmask 269312  }
  0xf5   :  { %v7016_v63 = vpop.eup %7015  ;;  %v6436_v0 = vpack.c.bf16 %v324_v58, %v323_v61  ;;  %v5217_v1 = vadd.f32 -1.0, %v7014_v60  ;;  %v291_v2 = vmul.f32 1.442695, %v267_v59  ;;  %v7212_v3 = vpop.f32.mrb[10].mxu0 }
  0xf6   :  { %v5216_v4 = vadd.f32 -1.0, %v7016_v63  ;;  %7025 = vpow2.f32 %v293_v62  ;;  %v270_v5 = vmin.f32 %v7212_v3, 0.0  ;;  %v7215_v6 = vpop.f32.mrb[11].mxu0  ;;  %vm254_vm12 = vcmp.gt.f32.partialorder %v7212_v3, 0.0 }
  0xf7   :  { %v326_v7 = vsel %vm246_vm4, %v5923_v33, %v5217_v1  ;;  %7027 = vpow2.f32 %v291_v2  ;;  %v269_v8 = vmin.f32 %v7215_v6, 0.0  ;;  %6437 = vmatprep.subr.bf16.mxu0 %v6436_v0  ;;  %6988 = vmatprep.subr.bf16.mxu1 %v6436_v0  ;;  %vm253_vm13 = vcmp.gt.f32.partialorder %v7215_v6, 0.0  ;;  %v656_v2 = vld [vmem:[%s8872_s3] sm:$0xff] }
  0xf8   :  { %v7018_v9 = vpop.eup %7017  ;;  %v325_v10 = vsel %vm245_vm5, %v174_v35, %v5216_v4  ;;  %v297_v11 = vmul.f32 1.442695, %v270_v5  ;;  %6439 = vmatpush3.bf16.msra.mxu0 %v6436_v0  ;;  %6996 = vmatpush3.bf16.msra.mxu1 %v6436_v0  ;;  %vm5177_vm4 = vcmask 1041408   ;;  %vm5178_vm5 = vcmask 1043458  }
  0xf9   :  { %v7020_v12 = vpop.eup %7019  ;;  %v6440_v13 = vpack.c.bf16 %v326_v7, %v325_v10  ;;  %v5219_v14 = vadd.f32 -1.0, %v7018_v9  ;;  %v295_v15 = vmul.f32 1.442695, %v269_v8  ;;  %v7218_v16 = vpop.f32.mrb[12].mxu0  ;;  %v5523_v7 = vld [vmem:[%s8871_s2 + $0x8] sm:$0xff]   ;;  %v5530_v8 = vld [vmem:[%s8871_s2 + $0x40] sm:$0xff]   ;;  %v5454_v10 = vunpack.c.h.bf16 %v7185_v23 }
  0xfa   :  { %v5218_v17 = vadd.f32 -1.0, %v7020_v12  ;;  %7029 = vpow2.f32 %v297_v11  ;;  %v272_v18 = vmin.f32 %v7218_v16, 0.0  ;;  %v7222_v19 = vpop.f32.mrb[13].mxu0  ;;  %vm256_vm14 = vcmp.gt.f32.partialorder %v7218_v16, 0.0  ;;  %v658_v12 = vld [vmem:[%s8872_s3 + $0x10] sm:$0xff]  ;;  %v5531_v23 = vld [vmem:[%s8871_s2 + $0x48] sm:$0xff]  }
  0xfb   :  { %v328_v20 = vsel %vm248_vm6, %v7194_v39, %v5219_v14  ;;  %7031 = vpow2.f32 %v295_v15  ;;  %v271_v21 = vmin.f32 %v7222_v19, 0.0  ;;  %6441 = vmatprep.subr.bf16.mxu0 %v6440_v13  ;;  %6989 = vmatprep.subr.bf16.mxu1 %v6440_v13  ;;  %vm255_vm15 = vcmp.gt.f32.partialorder %v7222_v19, 0.0  ;;  %vm5179_vm6 = vmor %vm5178_vm5, %vm5177_vm4 }
  0xfc   :  { %v7022_v22 = vpop.eup %7021  ;;  %v327_v24 = vsel %vm247_vm7, %v7197_v41, %v5218_v17  ;;  %v301_v26 = vmul.f32 1.442695, %v272_v18  ;;  %6443 = vmatpush3.bf16.msra.mxu0 %v6440_v13  ;;  %6997 = vmatpush3.bf16.msra.mxu1 %v6440_v13  ;;  %v5482_v11 = vunpack.c.h.bf16 %v7191_v25  ;;  %v659_v13 = vld [vmem:[%s8872_s3 + $0x18] sm:$0xff]  ;;  %v5457_v14 = vunpack.c.l.bf16 %v5523_v7 }
  0xfd   :  { %v7024_v27 = vpop.eup %7023  ;;  %v6444_v28 = vpack.c.bf16 %v328_v20, %v327_v24  ;;  %v5221_v29 = vadd.f32 -1.0, %v7022_v22  ;;  %v299_v30 = vmul.f32 1.442695, %v271_v21  ;;  %v7228_v31 = vpop.f32.mrb[14].mxu0  ;;  %v5485_v15 = vunpack.c.l.bf16 %v5530_v8  ;;  %v5525_v21 = vld [vmem:[%s8871_s2 + $0x18] sm:$0xff]   ;;  %v5532_v22 = vld [vmem:[%s8871_s2 + $0x50] sm:$0xff]  }
  0xfe   :  { %v5220_v32 = vadd.f32 -1.0, %v7024_v27  ;;  %7033 = vpow2.f32 %v301_v26  ;;  %v274_v33 = vmin.f32 %v7228_v31, 0.0  ;;  %v7232_v34 = vpop.f32.mrb[15].mxu0  ;;  %vm258_vm0 = vcmp.gt.f32.partialorder %v7228_v31, 0.0  ;;  %v660_v27 = vld [vmem:[%s8872_s3 + $0x20] sm:$0x1] }
  0xff   :  { %v330_v35 = vsel %vm250_vm8, %v7200_v45, %v5221_v29  ;;  %7035 = vpow2.f32 %v299_v30  ;;  %v273_v36 = vmin.f32 %v7232_v34, 0.0  ;;  %6445 = vmatprep.subr.bf16.mxu0 %v6444_v28  ;;  %6990 = vmatprep.subr.bf16.mxu1 %v6444_v28  ;;  %vm257_vm1 = vcmp.gt.f32.partialorder %v7232_v34, 0.0  ;;  %v5526_v30 = vld [vmem:[%s8871_s2 + $0x20] sm:$0xff]  }
 0x100   :  { %v7026_v37 = vpop.eup %7025  ;;  %v329_v38 = vsel %vm249_vm9, %v7203_v47, %v5220_v32  ;;  %v305_v39 = vmul.f32 1.442695, %v274_v33  ;;  %6447 = vmatpush3.bf16.msra.mxu0 %v6444_v28  ;;  %6998 = vmatpush3.bf16.msra.mxu1 %v6444_v28  ;;  %v6472_v25 = vpack.c.bf16 %v659_v13, %v658_v12  ;;  %v5458_v17 = vunpack.c.h.bf16 %v5523_v7  ;;  %v695_v7 = vld [vmem:[%s8872_s3 + $0x138] sm:$0x1] }
 0x101   :  { %v7028_v40 = vpop.eup %7027  ;;  %v6448_v41 = vpack.c.bf16 %v330_v35, %v329_v38  ;;  %v5223_v42 = vadd.f32 -1.0, %v7026_v37  ;;  %v303_v43 = vmul.f32 1.442695, %v273_v36  ;;  %v5486_v18 = vunpack.c.h.bf16 %v5530_v8  ;;  %v5527_v36 = vld [vmem:[%s8871_s2 + $0x28] sm:$0xff]   ;;  %v5534_v37 = vld [vmem:[%s8871_s2 + $0x60] sm:$0xff]   ;;  %v663_v8 = vld [vmem:[%s8872_s3 + $0x38] sm:$0xff] }
 0x102   :  { %v5222_v44 = vadd.f32 -1.0, %v7028_v40  ;;  %7037 = vpow2.f32 %v305_v39  ;;  %v5489_v20 = vunpack.c.l.bf16 %v5531_v23  ;;  %v5490_v26 = vunpack.c.h.bf16 %v5531_v23 }
 0x103   :  { %v332_v45 = vsel %vm252_vm10, %v7206_v54, %v5223_v42  ;;  %7039 = vpow2.f32 %v303_v43  ;;  %6449 = vmatprep.subr.bf16.mxu0 %v6448_v41  ;;  %6991 = vmatprep.subr.bf16.mxu1 %v6448_v41  ;;  %v5465_v28 = vunpack.c.l.bf16 %v5525_v21  ;;  %v5493_v29 = vunpack.c.l.bf16 %v5532_v22  ;;  %v5528_v42 = vld [vmem:[%s8871_s2 + $0x30] sm:$0xff]   ;;  %v5535_v43 = vld [vmem:[%s8871_s2 + $0x68] sm:$0xff]  }
 0x104   :  { %v7030_v46 = vpop.eup %7029  ;;  %v331_v47 = vsel %vm251_vm11, %v7209_v57, %v5222_v44  ;;  %6451 = vmatpush3.bf16.msra.mxu0 %v6448_v41  ;;  %6999 = vmatpush3.bf16.msra.mxu1 %v6448_v41  ;;  %v5466_v32 = vunpack.c.h.bf16 %v5525_v21  ;;  %v5494_v33 = vunpack.c.h.bf16 %v5532_v22  ;;  %v5470_v38 = vunpack.c.h.bf16 %v5526_v30  ;;  %v668_v21 = vld [vmem:[%s8872_s3 + $0x60] sm:$0xff]  ;;  %v669_v22 = vld [vmem:[%s8872_s3 + $0x68] sm:$0xff] }
 0x105   :  { %v7032_v48 = vpop.eup %7031  ;;  %v6452_v49 = vpack.c.bf16 %v332_v45, %v331_v47  ;;  %v5225_v50 = vadd.f32 -1.0, %v7030_v46  ;;  %v5473_v40 = vunpack.c.l.bf16 %v5527_v36  ;;  %v5501_v41 = vunpack.c.l.bf16 %v5534_v37 }
 0x106   :  { %v5224_v51 = vadd.f32 -1.0, %v7032_v48  ;;  %v5474_v44 = vunpack.c.h.bf16 %v5527_v36  ;;  %v5502_v45 = vunpack.c.h.bf16 %v5534_v37  ;;  %v5477_v46 = vunpack.c.l.bf16 %v5528_v42  ;;  %v5536_v48 = vld [vmem:[%s8871_s2 + $0x70] sm:$0xff]   ;;  %v671_v36 = vld [vmem:[%s8872_s3 + $0x78] sm:$0xff]  ;;  %v672_v37 = vld [vmem:[%s8872_s3 + $0x80] sm:$0xff] }
 0x107   :  { %v334_v52 = vsel %vm254_vm12, %v7212_v3, %v5225_v50  ;;  %6453 = vmatprep.subr.bf16.mxu0 %v6452_v49  ;;  %6992 = vmatprep.subr.bf16.mxu1 %v6452_v49  ;;  %v657_v3 = vld [vmem:[%s8872_s3 + $0x8] sm:$0xff]  ;;  %v5505_v47 = vunpack.c.l.bf16 %v5535_v43  ;;  %v5506_v50 = vunpack.c.h.bf16 %v5535_v43  ;;  %v6492_v43 = vpack.c.bf16 %v672_v37, %v671_v36  ;;  %v1681_v36 = vld [vmem:[%s8874_s5 + $0x50] sm:$0xff]  ;;  %v1679_v37 = vld [vmem:[%s8874_s5 + $0x40] sm:$0xff] }
 0x108   :  { %v7034_v53 = vpop.eup %7033  ;;  %v333_v54 = vsel %vm253_vm13, %v7215_v6, %v5224_v51  ;;  %6455 = vmatpush3.bf16.msra.mxu0 %v6452_v49  ;;  %7000 = vmatpush3.bf16.msra.mxu1 %v6452_v49  ;;  %v6468_v9 = vpack.c.bf16 %v657_v3, %v656_v2  ;;  %v5478_v49 = vunpack.c.h.bf16 %v5528_v42  ;;  %v5509_v51 = vunpack.c.l.bf16 %v5536_v48  ;;  %v692_v2 = vld [vmem:[%s8872_s3 + $0x120] sm:$0xff]  ;;  %v674_v42 = vld [vmem:[%s8872_s3 + $0x90] sm:$0xff] }
 0x109   :  { %v7036_v55 = vpop.eup %7035  ;;  %v6456_v56 = vpack.c.bf16 %v334_v52, %v333_v54  ;;  %v5227_v57 = vadd.f32 -1.0, %v7034_v53  ;;  %v5537_v52 = vld [vmem:[%s8871_s2 + $0x78] sm:$0xff]   ;;  %v5510_v53 = vunpack.c.h.bf16 %v5536_v48  ;;  %vm5180_vm7 = vcmask 259076  }
 0x10a   :  { %v5226_v58 = vadd.f32 -1.0, %v7036_v55  ;;  %v5513_v54 = vunpack.c.l.bf16 %v5537_v52  ;;  %v5538_v55 = vld [vmem:[%s8871_s2 + $0x80] sm:$0xff]   ;;  %vm5181_vm8 = vmor %vm5180_vm7, %vm5179_vm6 }
 0x10b   :  { %v336_v59 = vsel %vm256_vm14, %v7218_v16, %v5227_v57  ;;  %6457 = vmatprep.subr.bf16.mxu0 %v6456_v56  ;;  %6993 = vmatprep.subr.bf16.mxu1 %v6456_v56  ;;  %v5524_v16 = vld [vmem:[%s8871_s2 + $0x10] sm:$0xff]   ;;  %v5517_v57 = vunpack.c.l.bf16 %v5538_v55 }
 0x10c   :  { %v7038_v60 = vpop.eup %7037  ;;  %v335_v61 = vsel %vm255_vm15, %v7222_v19, %v5226_v58  ;;  %6459 = vmatpush3.bf16.msra.mxu0 %v6456_v56  ;;  %7001 = vmatpush3.bf16.msra.mxu1 %v6456_v56  ;;  %v5461_v19 = vunpack.c.l.bf16 %v5524_v16  ;;  %v5462_v24 = vunpack.c.h.bf16 %v5524_v16  ;;  %v5514_v56 = vunpack.c.h.bf16 %v5537_v52  ;;  %v5539_v58 = vld [vmem:[%s8871_s2 + $0x88] sm:$0xff]  }
 0x10d   :  { %v7040_v62 = vpop.eup %7039  ;;  %v6460_v63 = vpack.c.bf16 %v336_v59, %v335_v61  ;;  %v5229_v0 = vadd.f32 -1.0, %v7038_v60  ;;  %v5518_v59 = vunpack.c.h.bf16 %v5538_v55  ;;  %v5521_v60 = vunpack.c.l.bf16 %v5539_v58  ;;  %v677_v55 = vld [vmem:[%s8872_s3 + $0xa8] sm:$0xff] }
 0x10e   :  { %v5228_v1 = vadd.f32 -1.0, %v7040_v62  ;;  %v5522_v61 = vunpack.c.h.bf16 %v5539_v58  ;;  %v661_v62 = vld [vmem:[%s8872_s3 + $0x28] sm:$0xff] }
 0x10f   :  { %v338_v4 = vsel %vm258_vm0, %v7228_v31, %v5229_v0  ;;  %6461 = vmatprep.subr.bf16.mxu0 %v6460_v63  ;;  %6994 = vmatprep.subr.bf16.mxu1 %v6460_v63  ;;  %v5533_v31 = vld [vmem:[%s8871_s2 + $0x58] sm:$0xff]  }
 0x110   :  { %v337_v5 = vsel %vm257_vm1, %v7232_v34, %v5228_v1  ;;  %6463 = vmatpush3.bf16.msra.mxu0 %v6460_v63  ;;  %7002 = vmatpush3.bf16.msra.mxu1 %v6460_v63  ;;  %v5469_v34 = vunpack.c.l.bf16 %v5526_v30  ;;  %v5497_v35 = vunpack.c.l.bf16 %v5533_v31  ;;  %v5498_v39 = vunpack.c.h.bf16 %v5533_v31  ;;  %v662_v63 = vld [vmem:[%s8872_s3 + $0x30] sm:$0xff]  ;;  %v691_v1 = vld [vmem:[%s8872_s3 + $0x118] sm:$0xff] }
 0x111   :  { %v6464_v6 = vpack.c.bf16 %v338_v4, %v337_v5  ;;  %v6476_v0 = vpack.c.bf16 %v662_v63, %v661_v62  ;;  %v6524_v3 = vpack.c.bf16 %v692_v2, %v691_v1  ;;  %v693_v4 = vld [vmem:[%s8872_s3 + $0x128] sm:$0xff]  ;;  %v694_v5 = vld [vmem:[%s8872_s3 + $0x130] sm:$0xff] }
 0x112   :  { %v681_v1 = vld [vmem:[%s8872_s3 + $0xc8] sm:$0xff]  ;;  %v682_v2 = vld [vmem:[%s8872_s3 + $0xd0] sm:$0xff] }
 0x113   :  { %6465 = vmatprep.subr.bf16.mxu0 %v6464_v6  ;;  %6995 = vmatprep.subr.bf16.mxu1 %v6464_v6 }
 0x114   :  { %6467 = vmatpush3.bf16.msra.mxu0 %v6464_v6  ;;  %7003 = vmatpush3.bf16.msra.mxu1 %v6464_v6  ;;  %v6528_v6 = vpack.c.bf16 %v694_v5, %v693_v4  ;;  %v683_v5 = vld [vmem:[%s8872_s3 + $0xd8] sm:$0xff] }
 0x115   :  { %6469 = vmatprep.subr.bf16.mxu0 %v6468_v9  ;;  %6525 = vmatprep.subr.bf16.mxu1 %v6524_v3 }
 0x117   :  { %5975 = vmatmul.mubr.f32.vlgmr.msra.gmra.mrb[16].mxu0 %v5454_v10  ;;  %5996 = vmatmul.mubr.f32.vlgmr.msra.gmra.mrb[0].mxu1 %v5482_v11 }
 0x118   :  { %5977 = vmatprep.mubr.f32.mxu0 %v5457_v14  ;;  %5998 = vmatprep.mubr.f32.mxu1 %v5485_v15 }
 0x119   :  { %6471 = vmatpush3.bf16.msra.mxu0 %v6468_v9  ;;  %6527 = vmatpush3.bf16.msra.mxu1 %v6524_v3  ;;  %v664_v9 = vld [vmem:[%s8872_s3 + $0x40] sm:$0xff] }
 0x11a   :  { %6473 = vmatprep.subr.bf16.mxu0 %v6472_v25  ;;  %6529 = vmatprep.subr.bf16.mxu1 %v6528_v6  ;;  %v6480_v13 = vpack.c.bf16 %v664_v9, %v663_v8 }
 0x11b   :  { %5978 = vmatmul.mubr.f32.gmra.mrb[18].mxu0 %v5458_v17  ;;  %5999 = vmatmul.mubr.f32.gmra.mrb[2].mxu1 %v5486_v18  ;;  %v665_v17 = vld [vmem:[%s8872_s3 + $0x48] sm:$0x1]  ;;  %v666_v18 = vld [vmem:[%s8872_s3 + $0x50] sm:$0xff] }
 0x11c   :  { %5980 = vmatprep.mubr.f32.mxu0 %v5461_v19  ;;  %6001 = vmatprep.mubr.f32.mxu1 %v5489_v20  ;;  %v667_v19 = vld [vmem:[%s8872_s3 + $0x58] sm:$0xff] }
 0x11d   :  { %6475 = vmatpush3.bf16.msra.mxu0 %v6472_v25  ;;  %6531 = vmatpush3.bf16.msra.mxu1 %v6528_v6  ;;  %v684_v6 = vld [vmem:[%s8872_s3 + $0xe0] sm:$0xff] }
 0x11e   :  { %6036 = vmatprep.subr.msk.mxu0 %vm714_vm2, %v660_v27  ;;  %6148 = vmatprep.subr.msk.mxu1 %vm714_vm2, %v695_v7  ;;  %v6512_v9 = vpack.c.bf16 %v684_v6, %v683_v5 }
 0x11f   :  { %5981 = vmatmul.mubr.f32.gmra.mrb[20].mxu0 %v5462_v24  ;;  %6002 = vmatmul.mubr.f32.gmra.mrb[4].mxu1 %v5490_v26 }
 0x120   :  { %5983 = vmatprep.mubr.f32.mxu0 %v5465_v28  ;;  %6004 = vmatprep.mubr.f32.mxu1 %v5493_v29  ;;  %v6488_v29 = vpack.c.bf16 %v669_v22, %v668_v21 }
 0x121   :  { %6037 = vmatpush3.msk.msra.mxu0 %vm714_vm2, %v660_v27  ;;  %6149 = vmatpush3.msk.msra.mxu1 %vm714_vm2, %v695_v7  ;;  %v6484_v27 = vpack.c.bf16 %v667_v19, %v666_v18  ;;  %v6508_v7 = vpack.c.bf16 %v682_v2, %v681_v1  ;;  %v697_v18 = vld [vmem:[%s8872_s3 + $0x148] sm:$0xff]  ;;  %v698_v19 = vld [vmem:[%s8872_s3 + $0x150] sm:$0xff] }
 0x122   :  { %6477 = vmatprep.subr.bf16.mxu0 %v6476_v0 }
 0x123   :  { %5984 = vmatmul.mubr.f32.gmra.mrb[22].mxu0 %v5466_v32  ;;  %6005 = vmatmul.mubr.f32.gmra.mrb[6].mxu1 %v5494_v33 }
 0x124   :  { %5986 = vmatprep.mubr.f32.mxu0 %v5469_v34  ;;  %6007 = vmatprep.mubr.f32.mxu1 %v5497_v35  ;;  %v670_v35 = vld [vmem:[%s8872_s3 + $0x70] sm:$0x1] }
 0x127   :  { %5987 = vmatmul.mubr.f32.gmra.mrb[24].mxu0 %v5470_v38  ;;  %6008 = vmatmul.mubr.f32.gmra.mrb[8].mxu1 %v5498_v39 }
 0x128   :  { %5989 = vmatprep.mubr.f32.mxu0 %v5473_v40  ;;  %6010 = vmatprep.mubr.f32.mxu1 %v5501_v41  ;;  %v673_v41 = vld [vmem:[%s8872_s3 + $0x88] sm:$0xff] }
 0x12b   :  { %5990 = vmatmul.mubr.f32.gmra.mrb[26].mxu0 %v5474_v44  ;;  %6011 = vmatmul.mubr.f32.gmra.mrb[10].mxu1 %v5502_v45 }
 0x12c   :  { %5992 = vmatprep.mubr.f32.mxu0 %v5477_v46  ;;  %6013 = vmatprep.mubr.f32.mxu1 %v5505_v47  ;;  %v6496_v47 = vpack.c.bf16 %v674_v42, %v673_v41  ;;  %v1680_v41 = vld [vmem:[%s8874_s5 + $0x48] sm:$0xff] }
 0x12f   :  { %5993 = vmatmul.mubr.f32.gmra.mrb[28].mxu0 %v5478_v49  ;;  %6014 = vmatmul.mubr.f32.gmra.mrb[12].mxu1 %v5506_v50 }
 0x130   :  { %6016 = vmatprep.mubr.f32.mxu1 %v5509_v51 }
 0x133   :  { %6017 = vmatmul.mubr.f32.gmra.mrb[14].mxu1 %v5510_v53  ;;  %v675_v53 = vld [vmem:[%s8872_s3 + $0x98] sm:$0x1] }
 0x134   :  { %6019 = vmatprep.mubr.f32.mxu1 %v5513_v54  ;;  %v676_v54 = vld [vmem:[%s8872_s3 + $0xa0] sm:$0xff] }
 0x137   :  { %6020 = vmatmul.mubr.f32.gmra.mrb[16].mxu1 %v5514_v56  ;;  %v678_v56 = vld [vmem:[%s8872_s3 + $0xb0] sm:$0xff] }
 0x138   :  { %6022 = vmatprep.mubr.f32.mxu1 %v5517_v57  ;;  %v679_v57 = vld [vmem:[%s8872_s3 + $0xb8] sm:$0xff] }
 0x13b   :  { %6023 = vmatmul.mubr.f32.gmra.mrb[18].mxu1 %v5518_v59  ;;  %v6500_v59 = vpack.c.bf16 %v677_v55, %v676_v54 }
 0x13c   :  { %6025 = vmatprep.mubr.f32.mxu1 %v5521_v60 }
 0x13f   :  { %6026 = vmatmul.mubr.f32.gmra.mrb[20].mxu1 %v5522_v61  ;;  %v6504_v61 = vpack.c.bf16 %v679_v57, %v678_v56 }
 0x1ea   :  { %v5976_v10 = vpop.f32.mrb[16].mxu0  ;;  %v7350_v11 = vpop.f32.mrb[0].mxu1 }
 0x1eb   :  { %v477_v12 = vpop.f32.mrb[17].mxu0  ;;  %v7352_v14 = vpop.f32.mrb[1].mxu1 }
 0x1ec   :  { %6038 = vmatprep.mubr.msk.f32.mxu0 %vm701_vm3, %v477_v12  ;;  %v686_v12 = vld [vmem:[%s8872_s3 + $0xf0] sm:$0xff] }
 0x1ed   :  { %6039 = vmatmul.mubr.msk.f32.vlgmr.msra.gmra.mrb[30].mxu0 %vm701_vm3, %v5976_v10 }
 0x1ee   :  { %6479 = vmatpush3.bf16.msra.mxu0 %v6476_v0  ;;  %v5979_v15 = vpop.f32.mrb[18].mxu0  ;;  %v7356_v16 = vpop.f32.mrb[2].mxu1  ;;  %v680_v0 = vld [vmem:[%s8872_s3 + $0xc0] sm:$0x1] }
 0x1ef   :  { %v487_v23 = vpop.f32.mrb[19].mxu0  ;;  %6481 = vmatprep.subr.bf16.mxu0 %v6480_v13  ;;  %v7358_v25 = vpop.f32.mrb[3].mxu1 }
 0x1f0   :  { %6041 = vmatprep.mubr.msk.f32.mxu0 %vm701_vm3, %v487_v23 }
 0x1f1   :  { %6042 = vmatmul.mubr.msk.f32.gmra.mrb[32].mxu0 %vm701_vm3, %v5979_v15  ;;  %v689_v15 = vld [vmem:[%s8872_s3 + $0x108] sm:$0xff] }
 0x1f2   :  { %6483 = vmatpush3.bf16.msra.mxu0 %v6480_v13  ;;  %v5982_v20 = vpop.f32.mrb[20].mxu0  ;;  %v7377_v24 = vpop.f32.mrb[4].mxu1  ;;  %v687_v13 = vld [vmem:[%s8872_s3 + $0xf8] sm:$0xff] }
 0x1f3   :  { %v497_v26 = vpop.f32.mrb[21].mxu0  ;;  %6052 = vmatprep.subr.msk.mxu0 %vm714_vm2, %v665_v17  ;;  %v7380_v28 = vpop.f32.mrb[5].mxu1 }
 0x1f4   :  { %6054 = vmatprep.mubr.msk.f32.mxu0 %vm701_vm3, %v497_v26  ;;  %v1672_v26 = vld [vmem:[%s8874_s5 + $0x8] sm:$0xff] }
 0x1f6   :  { %6053 = vmatpush3.msk.msra.mxu0 %vm714_vm2, %v665_v17  ;;  %v5985_v30 = vpop.f32.mrb[22].mxu0  ;;  %v7384_v31 = vpop.f32.mrb[6].mxu1  ;;  %v696_v17 = vld [vmem:[%s8872_s3 + $0x140] sm:$0xff] }
 0x1f7   :  { %6055 = vmatmul.mubr.msk.f32.vlgmr.msra.gmra.mrb[34].mxu0 %vm701_vm3, %v5982_v20  ;;  %6485 = vmatprep.subr.bf16.mxu0 %v6484_v27  ;;  %v507_v32 = vpop.f32.mrb[23].mxu0  ;;  %v7387_v33 = vpop.f32.mrb[7].mxu1  ;;  %v699_v20 = vld [vmem:[%s8872_s3 + $0x158] sm:$0xff]  ;;  %v6532_v21 = vpack.c.bf16 %v697_v18, %v696_v17 }
 0x1f8   :  { %6487 = vmatpush3.bf16.msra.mxu0 %v6484_v27  ;;  %6057 = vmatprep.mubr.msk.f32.mxu0 %vm701_vm3, %v507_v32  ;;  %v6536_v22 = vpack.c.bf16 %v699_v20, %v698_v19  ;;  %v1675_v27 = vld [vmem:[%s8874_s5 + $0x20] sm:$0xff]  ;;  %v1674_v32 = vld [vmem:[%s8874_s5 + $0x18] sm:$0xff] }
 0x1f9   :  { %6489 = vmatprep.subr.bf16.mxu0 %v6488_v29 }
 0x1fa   :  { %v5988_v34 = vpop.f32.mrb[24].mxu0  ;;  %v7399_v38 = vpop.f32.mrb[8].mxu1 }
 0x1fb   :  { %6058 = vmatmul.mubr.msk.f32.gmra.mrb[36].mxu0 %vm701_vm3, %v5985_v30  ;;  %v517_v39 = vpop.f32.mrb[25].mxu0  ;;  %v7402_v40 = vpop.f32.mrb[9].mxu1  ;;  %v1676_v30 = vld [vmem:[%s8874_s5 + $0x28] sm:$0xff] }
 0x1fc   :  { %6491 = vmatpush3.bf16.msra.mxu0 %v6488_v29  ;;  %6070 = vmatprep.mubr.msk.f32.mxu0 %vm701_vm3, %v517_v39  ;;  %v6540_v29 = vpack.c.bf16 %v1675_v27, %v1672_v26  ;;  %v1682_v39 = vld [vmem:[%s8874_s5 + $0x58] sm:$0xff] }
 0x1fd   :  { %6068 = vmatprep.subr.msk.mxu0 %vm714_vm2, %v670_v35  ;;  %v6552_v42 = vpack.c.bf16 %v1682_v39, %v1679_v37 }
 0x1fe   :  { %v5991_v44 = vpop.f32.mrb[26].mxu0  ;;  %v7412_v45 = vpop.f32.mrb[10].mxu1  ;;  %6541 = vmatprep.subr.bf16.mxu1 %v6540_v29 }
 0x1ff   :  { %v527_v46 = vpop.f32.mrb[27].mxu0  ;;  %v7414_v48 = vpop.f32.mrb[11].mxu1 }
 0x200   :  { %6069 = vmatpush3.msk.msra.mxu0 %vm714_vm2, %v670_v35  ;;  %v1678_v35 = vld [vmem:[%s8874_s5 + $0x38] sm:$0xff] }
 0x201   :  { %6071 = vmatmul.mubr.msk.f32.vlgmr.msra.gmra.mrb[38].mxu0 %vm701_vm3, %v5988_v34  ;;  %6493 = vmatprep.subr.bf16.mxu0 %v6492_v43 }
 0x202   :  { %6495 = vmatpush3.bf16.msra.mxu0 %v6492_v43  ;;  %6073 = vmatprep.mubr.msk.f32.mxu0 %vm701_vm3, %v527_v46  ;;  %v5994_v49 = vpop.f32.mrb[28].mxu0  ;;  %v7419_v50 = vpop.f32.mrb[12].mxu1  ;;  %v1688_v46 = vld [vmem:[%s8874_s5 + $0x88] sm:$0xff] }
 0x203   :  { %6497 = vmatprep.subr.bf16.mxu0 %v6496_v47  ;;  %v537_v51 = vpop.f32.mrb[29].mxu0  ;;  %v7421_v52 = vpop.f32.mrb[13].mxu1 }
 0x205   :  { %6074 = vmatmul.mubr.msk.f32.gmra.mrb[40].mxu0 %vm701_vm3, %v5991_v44  ;;  %v1684_v44 = vld [vmem:[%s8874_s5 + $0x68] sm:$0x1] }
 0x206   :  { %6499 = vmatpush3.bf16.msra.mxu0 %v6496_v47  ;;  %6086 = vmatprep.mubr.msk.f32.mxu0 %vm701_vm3, %v537_v51  ;;  %v6018_v58 = vpop.f32.mrb[14].mxu1  ;;  %v1683_v47 = vld [vmem:[%s8874_s5 + $0x60] sm:$0x1] }
 0x207   :  { %6084 = vmatprep.subr.msk.mxu0 %vm714_vm2, %v675_v53  ;;  %v617_v60 = vpop.f32.mrb[15].mxu1  ;;  %v1687_v51 = vld [vmem:[%s8874_s5 + $0x80] sm:$0xff] }
 0x208   :  { %6150 = vmatprep.mubr.msk.f32.mxu1 %vm701_vm3, %v617_v60 }
 0x209   :  { %6151 = vmatmul.mubr.msk.f32.vlgmr.msra.gmra.mrb[22].mxu1 %vm701_vm3, %v6018_v58 }
 0x20a   :  { %6085 = vmatpush3.msk.msra.mxu0 %vm714_vm2, %v675_v53  ;;  %v6021_v62 = vpop.f32.mrb[16].mxu1 }
 0x20b   :  { %6087 = vmatmul.mubr.msk.f32.vlgmr.msra.gmra.mrb[42].mxu0 %vm701_vm3, %v5994_v49  ;;  %6501 = vmatprep.subr.bf16.mxu0 %v6500_v59  ;;  %v627_v63 = vpop.f32.mrb[17].mxu1  ;;  %v7065_v49 = vmov 0.0  }
 0x20c   :  { %6503 = vmatpush3.bf16.msra.mxu0 %v6500_v59  ;;  %6089 = vmatprep.mubr.msk.f32.mxu0 %vm701_vm3, %v7352_v14  ;;  %v688_v14 = vld [vmem:[%s8872_s3 + $0x100] sm:$0xff] }
 0x20d   :  { %6505 = vmatprep.subr.bf16.mxu0 %v6504_v61  ;;  %6153 = vmatprep.mubr.msk.f32.mxu1 %vm701_vm3, %v627_v63  ;;  %v6520_v23 = vpack.c.bf16 %v689_v15, %v688_v14 }
 0x20e   :  { %6154 = vmatmul.mubr.msk.f32.gmra.mrb[24].mxu1 %vm701_vm3, %v6021_v62  ;;  %v6024_v3 = vpop.f32.mrb[18].mxu1 }
 0x20f   :  { %6090 = vmatmul.mubr.msk.f32.gmra.mrb[44].mxu0 %vm701_vm3, %v7350_v11  ;;  %v637_v4 = vpop.f32.mrb[19].mxu1  ;;  %v685_v11 = vld [vmem:[%s8872_s3 + $0xe8] sm:$0x1]  ;;  %1996 = vmatprep.mubr.f32.mxu1 %v7065_v49 }
 0x210   :  { %6507 = vmatpush3.bf16.msra.mxu0 %v6504_v61  ;;  %6102 = vmatprep.mubr.msk.f32.mxu0 %vm701_vm3, %v7358_v25  ;;  %v690_v25 = vld [vmem:[%s8872_s3 + $0x110] sm:$0x1] }
 0x211   :  { %6100 = vmatprep.subr.msk.mxu0 %vm714_vm2, %v680_v0 }
 0x212   :  { %v6027_v8 = vpop.f32.mrb[20].mxu1 }
 0x213   :  { %v647_v10 = vpop.f32.mrb[21].mxu1 }
 0x214   :  { %6101 = vmatpush3.msk.msra.mxu0 %vm714_vm2, %v680_v0 }
 0x215   :  { %6103 = vmatmul.mubr.msk.f32.vlgmr.msra.gmra.mrb[46].mxu0 %vm701_vm3, %v7356_v16  ;;  %6509 = vmatprep.subr.bf16.mxu0 %v6508_v7  ;;  %v6516_v16 = vpack.c.bf16 %v687_v13, %v686_v12 }
 0x216   :  { %6105 = vmatprep.mubr.msk.f32.mxu0 %vm701_vm3, %v7380_v28  ;;  %6511 = vmatpush3.bf16.msra.mxu0 %v6508_v7  ;;  %v1673_v28 = vld [vmem:[%s8874_s5 + $0x10] sm:$0xff] }
 0x217   :  { %6513 = vmatprep.subr.bf16.mxu0 %v6512_v9 }
 0x219   :  { %6106 = vmatmul.mubr.msk.f32.gmra.mrb[48].mxu0 %vm701_vm3, %v7377_v24  ;;  %v700_v24 = vld [vmem:[%s8872_s3 + $0x160] sm:$0x1] }
 0x21a   :  { %6515 = vmatpush3.bf16.msra.mxu0 %v6512_v9  ;;  %6118 = vmatprep.mubr.msk.f32.mxu0 %vm701_vm3, %v7387_v33  ;;  %v6548_v33 = vpack.c.bf16 %v1676_v30, %v1673_v28 }
 0x21b   :  { %6116 = vmatprep.subr.msk.mxu0 %vm714_vm2, %v685_v11 }
 0x21e   :  { %6117 = vmatpush3.msk.msra.mxu0 %vm714_vm2, %v685_v11 }
 0x21f   :  { %6119 = vmatmul.mubr.msk.f32.vlgmr.msra.gmra.mrb[50].mxu0 %vm701_vm3, %v7384_v31  ;;  %6517 = vmatprep.subr.bf16.mxu0 %v6516_v16  ;;  %v1671_v31 = vld [vmem:[%s8874_s5] sm:$0xff] }
 0x220   :  { %6121 = vmatprep.mubr.msk.f32.mxu0 %vm701_vm3, %v7402_v40  ;;  %6519 = vmatpush3.bf16.msra.mxu0 %v6516_v16  ;;  %v6542_v34 = vpack.c.bf16 %v1674_v32, %v1671_v31  ;;  %v1677_v40 = vld [vmem:[%s8874_s5 + $0x30] sm:$0xff] }
 0x221   :  { %6521 = vmatprep.subr.bf16.mxu0 %v6520_v23  ;;  %v6546_v43 = vpack.c.bf16 %v1680_v41, %v1677_v40 }
 0x222   :  { %6543 = vmatpush1.bf16.msra.mxu1 %v6542_v34 }
 0x223   :  { %6122 = vmatmul.mubr.msk.f32.gmra.mrb[52].mxu0 %vm701_vm3, %v7399_v38  ;;  %v6544_v38 = vpack.c.bf16 %v1681_v36, %v1678_v35 }
 0x224   :  { %6523 = vmatpush3.bf16.msra.mxu0 %v6520_v23  ;;  %6134 = vmatprep.mubr.msk.f32.mxu0 %vm701_vm3, %v7414_v48  ;;  %v1691_v48 = vld [vmem:[%s8874_s5 + $0xa0] sm:$0xff] }
 0x225   :  { %6132 = vmatprep.subr.msk.mxu0 %vm714_vm2, %v690_v25  ;;  %6545 = vmatprep.subr.bf16.mxu1 %v6544_v38 }
 0x226   :  { %6547 = vmatpush1.bf16.msra.mxu1 %v6546_v43 }
 0x227   :  { %5275 = vmatprep.subr.msk.mxu1 %vm714_vm2, %v1684_v44 }
 0x228   :  { %6133 = vmatpush3.msk.msra.mxu0 %vm714_vm2, %v690_v25 }
 0x229   :  { %6135 = vmatmul.mubr.msk.f32.vlgmr.msra.gmra.mrb[54].mxu0 %vm701_vm3, %v7412_v45  ;;  %6533 = vmatprep.subr.bf16.mxu0 %v6532_v21  ;;  %v1685_v45 = vld [vmem:[%s8874_s5 + $0x70] sm:$0x1] }
 0x22a   :  { %6137 = vmatprep.mubr.msk.f32.mxu0 %vm701_vm3, %v7421_v52  ;;  %6535 = vmatpush3.bf16.msra.mxu0 %v6532_v21  ;;  %v1690_v52 = vld [vmem:[%s8874_s5 + $0x98] sm:$0xff] }
 0x22b   :  { %6537 = vmatprep.subr.bf16.mxu0 %v6536_v22  ;;  %5276 = vmatpush1.msk.msra.mxu1 %vm714_vm2, %v1683_v47  ;;  %v6556_v53 = vpack.c.bf16 %v1690_v52, %v1687_v51 }
 0x22d   :  { %6138 = vmatmul.mubr.msk.f32.gmra.mrb[56].mxu0 %vm701_vm3, %v7419_v50  ;;  %v7590_v50 = vpack.c.bf16 %v1691_v48, %v1688_v46  ;;  %6557 = vmatprep.subr.bf16.mxu1 %v6556_v53 }
 0x22e   :  { %6539 = vmatpush3.bf16.msra.mxu0 %v6536_v22  ;;  %6166 = vmatprep.mubr.msk.f32.mxu0 %vm701_vm3, %v637_v4 }
 0x22f   :  { %6164 = vmatprep.subr.msk.mxu0 %vm714_vm2, %v700_v24 }
 0x232   :  { %6165 = vmatpush3.msk.msra.mxu0 %vm714_vm2, %v700_v24 }
 0x233   :  { %6167 = vmatmul.mubr.msk.f32.vlgmr.msra.gmra.mrb[58].mxu0 %vm701_vm3, %v6024_v3  ;;  %6549 = vmatprep.subr.bf16.mxu0 %v6548_v33 }
 0x234   :  { %6169 = vmatprep.mubr.msk.f32.mxu0 %vm701_vm3, %v647_v10  ;;  %6551 = vmatpush3.bf16.msra.mxu0 %v6548_v33 }
 0x235   :  { %6553 = vmatprep.subr.bf16.mxu0 %v6552_v42 }
 0x237   :  { %6170 = vmatmul.mubr.msk.f32.gmra.mrb[60].mxu0 %vm701_vm3, %v6027_v8 }
 0x238   :  { %6555 = vmatpush3.bf16.msra.mxu0 %v6552_v42 }
 0x239   :  { %6180 = vmatprep.subr.msk.mxu0 %vm714_vm2, %v1685_v45 }
 0x23c   :  { %6181 = vmatpush3.msk.msra.mxu0 %vm714_vm2, %v1685_v45 }
 0x23d   :  { %6565 = vmatprep.subr.bf16.mxu0 %v7590_v50 }
 0x2c0   :  { %v6040_v54 = vpop.f32.mrb[30].mxu0 }
 0x2c1   :  { %v784_v55 = vpop.f32.mrb[31].mxu0  ;;  %v1620_v59 = vsel %vm701_vm3, %v6040_v54, 0.0 }
 0x2c2   :  { %v1603_v62 = vsel %vm701_vm3, %v784_v55, 0.0 }
 0x2c4   :  { %v6043_v56 = vpop.f32.mrb[32].mxu0 }
 0x2c5   :  { %v794_v57 = vpop.f32.mrb[33].mxu0  ;;  %v1654_v3 = vsel %vm701_vm3, %v6043_v56, 0.0 }
 0x2c6   :  { %v1637_v6 = vsel %vm701_vm3, %v794_v57, 0.0 }
 0x2ca   :  { %v6056_v58 = vpop.f32.mrb[34].mxu0 }
 0x2cb   :  { %v1621_v60 = vsel %vm701_vm3, %v6056_v58, 0.0  ;;  %v884_v61 = vpop.f32.mrb[35].mxu0 }
 0x2cc   :  { %v1622_v63 = vadd.f32 %v1621_v60, %v1620_v59  ;;  %v1604_v0 = vsel %vm701_vm3, %v884_v61, 0.0 }
 0x2cd   :  { %v1605_v1 = vadd.f32 %v1604_v0, %v1603_v62 }
 0x2ce   :  { %v6059_v2 = vpop.f32.mrb[36].mxu0 }
 0x2cf   :  { %v1655_v4 = vsel %vm701_vm3, %v6059_v2, 0.0  ;;  %v894_v5 = vpop.f32.mrb[37].mxu0 }
 0x2d0   :  { %v1656_v7 = vadd.f32 %v1655_v4, %v1654_v3  ;;  %v1638_v8 = vsel %vm701_vm3, %v894_v5, 0.0 }
 0x2d1   :  { %v1639_v9 = vadd.f32 %v1638_v8, %v1637_v6 }
 0x2d4   :  { %v6072_v10 = vpop.f32.mrb[38].mxu0 }
 0x2d5   :  { %v1623_v11 = vsel %vm701_vm3, %v6072_v10, 0.0  ;;  %v984_v12 = vpop.f32.mrb[39].mxu0 }
 0x2d6   :  { %v1624_v13 = vadd.f32 %v1623_v11, %v1622_v63  ;;  %v1606_v14 = vsel %vm701_vm3, %v984_v12, 0.0 }
 0x2d7   :  { %v1607_v15 = vadd.f32 %v1606_v14, %v1605_v1 }
 0x2d8   :  { %v6075_v16 = vpop.f32.mrb[40].mxu0 }
 0x2d9   :  { %v1657_v23 = vsel %vm701_vm3, %v6075_v16, 0.0  ;;  %v994_v25 = vpop.f32.mrb[41].mxu0 }
 0x2da   :  { %v1658_v17 = vadd.f32 %v1657_v23, %v1656_v7  ;;  %v1640_v18 = vsel %vm701_vm3, %v994_v25, 0.0 }
 0x2db   :  { %v1641_v19 = vadd.f32 %v1640_v18, %v1639_v9  ;;  %v1686_v18 = vld [vmem:[%s8874_s5 + $0x78] sm:$0xff] }
 0x2dc   :  { %v6152_v20 = vpop.f32.mrb[22].mxu1 }
 0x2dd   :  { %v1484_v21 = vpop.f32.mrb[23].mxu1  ;;  %v1633_v5 = vsel %vm701_vm3, %v6152_v20, 0.0 }
 0x2de   :  { %v6088_v22 = vpop.f32.mrb[42].mxu0  ;;  %v1616_v8 = vsel %vm701_vm3, %v1484_v21, 0.0  ;;  %v1694_v21 = vld [vmem:[%s8874_s5 + $0xb8] sm:$0xff] }
 0x2df   :  { %v1625_v24 = vsel %vm701_vm3, %v6088_v22, 0.0  ;;  %v1084_v26 = vpop.f32.mrb[43].mxu0 }
 0x2e0   :  { %v1626_v27 = vadd.f32 %v1625_v24, %v1624_v13  ;;  %v1608_v28 = vsel %vm701_vm3, %v1084_v26, 0.0  ;;  %v1697_v26 = vld [vmem:[%s8874_s5 + $0xd0] sm:$0xff] }
 0x2e1   :  { %v1609_v29 = vadd.f32 %v1608_v28, %v1607_v15  ;;  %v6155_v30 = vpop.f32.mrb[24].mxu1  ;;  %v1696_v28 = vld [vmem:[%s8874_s5 + $0xc8] sm:$0xff] }
 0x2e2   :  { %v6091_v31 = vpop.f32.mrb[44].mxu0  ;;  %v1494_v32 = vpop.f32.mrb[25].mxu1  ;;  %v1667_v15 = vsel %vm701_vm3, %v6155_v30, 0.0 }
 0x2e3   :  { %v1659_v33 = vsel %vm701_vm3, %v6091_v31, 0.0  ;;  %v1094_v34 = vpop.f32.mrb[45].mxu0  ;;  %v1650_v25 = vsel %vm701_vm3, %v1494_v32, 0.0 }
 0x2e4   :  { %v1660_v35 = vadd.f32 %v1659_v33, %v1658_v17  ;;  %v1642_v36 = vsel %vm701_vm3, %v1094_v34, 0.0  ;;  %v6568_v34 = vpack.c.bf16 %v1697_v26, %v1694_v21  ;;  %v1734_v26 = vld [vmem:[%s8874_s5 + $0x1f8] sm:$0xff] }
 0x2e5   :  { %v1643_v37 = vadd.f32 %v1642_v36, %v1641_v19  ;;  %v1689_v19 = vld [vmem:[%s8874_s5 + $0x90] sm:$0xff] }
 0x2e6   :  { %v6558_v31 = vpack.c.bf16 %v1689_v19, %v1686_v18  ;;  %v1735_v18 = vld [vmem:[%s8874_s5 + $0x200] sm:$0xff] }
 0x2e8   :  { %v6104_v38 = vpop.f32.mrb[46].mxu0 }
 0x2e9   :  { %v1627_v39 = vsel %vm701_vm3, %v6104_v38, 0.0  ;;  %v1184_v40 = vpop.f32.mrb[47].mxu0  ;;  %v1692_v38 = vld [vmem:[%s8874_s5 + $0xa8] sm:$0xff] }
 0x2ea   :  { %v1628_v41 = vadd.f32 %v1627_v39, %v1626_v27  ;;  %v1610_v42 = vsel %vm701_vm3, %v1184_v40, 0.0  ;;  %v1693_v27 = vld [vmem:[%s8874_s5 + $0xb0] sm:$0xff]  ;;  %v1695_v39 = vld [vmem:[%s8874_s5 + $0xc0] sm:$0xff] }
 0x2eb   :  { %v1611_v43 = vadd.f32 %v1610_v42, %v1609_v29 }
 0x2ec   :  { %v6107_v44 = vpop.f32.mrb[48].mxu0 }
 0x2ed   :  { %v1661_v45 = vsel %vm701_vm3, %v6107_v44, 0.0  ;;  %v1194_v46 = vpop.f32.mrb[49].mxu0  ;;  %v1700_v44 = vld [vmem:[%s8874_s5 + $0xe8] sm:$0x1] }
 0x2ee   :  { %v1662_v47 = vadd.f32 %v1661_v45, %v1660_v35  ;;  %v1644_v48 = vsel %vm701_vm3, %v1194_v46, 0.0  ;;  %v6560_v35 = vpack.c.bf16 %v1696_v28, %v1693_v27  ;;  %v1702_v45 = vld [vmem:[%s8874_s5 + $0xf8] sm:$0xff]  ;;  %v1699_v46 = vld [vmem:[%s8874_s5 + $0xe0] sm:$0x1] }
 0x2ef   :  { %v1645_v51 = vadd.f32 %v1644_v48, %v1643_v37  ;;  %v1704_v48 = vld [vmem:[%s8874_s5 + $0x108] sm:$0xff]  ;;  %v1738_v28 = vld [vmem:[%s8874_s5 + $0x218] sm:$0xff] }
 0x2f2   :  { %v6120_v52 = vpop.f32.mrb[50].mxu0 }
 0x2f3   :  { %v1629_v53 = vsel %vm701_vm3, %v6120_v52, 0.0  ;;  %v1284_v54 = vpop.f32.mrb[51].mxu0  ;;  %v1711_v52 = vld [vmem:[%s8874_s5 + $0x140] sm:$0xff] }
 0x2f4   :  { %v1630_v55 = vadd.f32 %v1629_v53, %v1628_v41  ;;  %v1612_v56 = vsel %vm701_vm3, %v1284_v54, 0.0 }
 0x2f5   :  { %v1613_v57 = vadd.f32 %v1612_v56, %v1611_v43  ;;  %v6562_v43 = vpack.c.bf16 %v1695_v39, %v1692_v38  ;;  %v1706_v56 = vld [vmem:[%s8874_s5 + $0x118] sm:$0xff]  ;;  %v1733_v38 = vld [vmem:[%s8874_s5 + $0x1f0] sm:$0xff]  ;;  %v1736_v39 = vld [vmem:[%s8874_s5 + $0x208] sm:$0xff] }
 0x2f6   :  { %v6123_v58 = vpop.f32.mrb[52].mxu0 }
 0x2f7   :  { %v1663_v59 = vsel %vm701_vm3, %v6123_v58, 0.0  ;;  %v1294_v60 = vpop.f32.mrb[53].mxu0  ;;  %v1707_v58 = vld [vmem:[%s8874_s5 + $0x120] sm:$0xff] }
 0x2f8   :  { %v1664_v61 = vadd.f32 %v1663_v59, %v1662_v47  ;;  %v1646_v62 = vsel %vm701_vm3, %v1294_v60, 0.0  ;;  %v1701_v47 = vld [vmem:[%s8874_s5 + $0xf0] sm:$0xff]  ;;  %v1710_v59 = vld [vmem:[%s8874_s5 + $0x138] sm:$0xff] }
 0x2f9   :  { %v1647_v63 = vadd.f32 %v1646_v62, %v1645_v51  ;;  %v1708_v51 = vld [vmem:[%s8874_s5 + $0x128] sm:$0xff]  ;;  %v6574_v54 = vpack.c.bf16 %v1704_v48, %v1701_v47  ;;  %v1698_v60 = vld [vmem:[%s8874_s5 + $0xd8] sm:$0x1]  ;;  %v6578_v62 = vpack.c.bf16 %v1710_v59, %v1707_v58 }
 0x2fa   :  { %v1748_v48 = vld [vmem:[%s8874_s5 + $0x268] sm:$0xff]  ;;  %v1750_v58 = vld [vmem:[%s8874_s5 + $0x278] sm:$0xff] }
 0x2fc   :  { %v6136_v0 = vpop.f32.mrb[54].mxu0 }
 0x2fd   :  { %v1631_v1 = vsel %vm701_vm3, %v6136_v0, 0.0  ;;  %v1384_v2 = vpop.f32.mrb[55].mxu0  ;;  %v1712_v0 = vld [vmem:[%s8874_s5 + $0x148] sm:$0xff] }
 0x2fe   :  { %v1632_v3 = vadd.f32 %v1631_v1, %v1630_v55  ;;  %v1614_v4 = vsel %vm701_vm3, %v1384_v2, 0.0  ;;  %v1703_v55 = vld [vmem:[%s8874_s5 + $0x100] sm:$0xff]  ;;  %v1714_v1 = vld [vmem:[%s8874_s5 + $0x158] sm:$0x1] }
 0x2ff   :  { %v1615_v6 = vadd.f32 %v1614_v4, %v1613_v57  ;;  %v6576_v57 = vpack.c.bf16 %v1711_v52, %v1708_v51  ;;  %v1721_v4 = vld [vmem:[%s8874_s5 + $0x190] sm:$0xff]  ;;  %v1751_v51 = vld [vmem:[%s8874_s5 + $0x280] sm:$0xff] }
 0x300   :  { %v1634_v7 = vadd.f32 %v1633_v5, %v1632_v3  ;;  %v6139_v9 = vpop.f32.mrb[56].mxu0  ;;  %v1718_v3 = vld [vmem:[%s8874_s5 + $0x178] sm:$0xff]  ;;  %v1713_v5 = vld [vmem:[%s8874_s5 + $0x150] sm:$0x1]  ;;  %v1743_v52 = vld [vmem:[%s8874_s5 + $0x240] sm:$0x1] }
 0x301   :  { %v1617_v10 = vadd.f32 %v1616_v8, %v1615_v6  ;;  %v1665_v11 = vsel %vm701_vm3, %v6139_v9, 0.0  ;;  %v1394_v12 = vpop.f32.mrb[57].mxu0  ;;  %v6596_v6 = vpack.c.bf16 %v1721_v4, %v1718_v3  ;;  %v1727_v8 = vld [vmem:[%s8874_s5 + $0x1c0] sm:$0xff]  ;;  %v1765_v3 = vld [vmem:[%s8874_s5 + $0x2f0] sm:$0xff] }
 0x302   :  { %v1666_v13 = vadd.f32 %v1665_v11, %v1664_v61  ;;  %v1648_v14 = vsel %vm701_vm3, %v1394_v12, 0.0  ;;  %v6580_v61 = vpack.c.bf16 %v1706_v56, %v1703_v55  ;;  %v1715_v9 = vld [vmem:[%s8874_s5 + $0x160] sm:$0x1]  ;;  %v1720_v11 = vld [vmem:[%s8874_s5 + $0x188] sm:$0xff]  ;;  %v1757_v55 = vld [vmem:[%s8874_s5 + $0x2b0] sm:$0xff] }
 0x303   :  { %v1649_v16 = vadd.f32 %v1648_v14, %v1647_v63  ;;  %v1709_v63 = vld [vmem:[%s8874_s5 + $0x130] sm:$0xff]  ;;  %v1716_v14 = vld [vmem:[%s8874_s5 + $0x168] sm:$0xff] }
 0x304   :  { %v1668_v23 = vadd.f32 %v1667_v15, %v1666_v13  ;;  %v6584_v2 = vpack.c.bf16 %v1712_v0, %v1709_v63  ;;  %v1719_v15 = vld [vmem:[%s8874_s5 + $0x180] sm:$0xff]  ;;  %v1745_v56 = vld [vmem:[%s8874_s5 + $0x250] sm:$0x1]  ;;  %v1760_v63 = vld [vmem:[%s8874_s5 + $0x2c8] sm:$0x1] }
 0x305   :  { %v1651_v17 = vadd.f32 %v1650_v25, %v1649_v16  ;;  %v1730_v16 = vld [vmem:[%s8874_s5 + $0x1d8] sm:$0x1]  ;;  %v6590_v19 = vpack.c.bf16 %v1719_v15, %v1716_v14  ;;  %v1753_v0 = vld [vmem:[%s8874_s5 + $0x290] sm:$0xff]  ;;  %v1767_v15 = vld [vmem:[%s8874_s5 + $0x300] sm:$0xff] }
 0x306   :  { %v6168_v20 = vpop.f32.mrb[58].mxu0  ;;  %v1726_v25 = vld [vmem:[%s8874_s5 + $0x1b8] sm:$0xff] }
 0x307   :  { %v1635_v22 = vsel %vm701_vm3, %v6168_v20, 0.0  ;;  %v1584_v24 = vpop.f32.mrb[59].mxu0  ;;  %v1722_v20 = vld [vmem:[%s8874_s5 + $0x198] sm:$0xff] }
 0x308   :  { %v7651_v29 = vadd.f32 %v1635_v22, %v1634_v7  ;;  %v1618_v30 = vsel %vm701_vm3, %v1584_v24, 0.0  ;;  %v1724_v7 = vld [vmem:[%s8874_s5 + $0x1a8] sm:$0xff]  ;;  %v1725_v22 = vld [vmem:[%s8874_s5 + $0x1b0] sm:$0xff]  ;;  %v1731_v24 = vld [vmem:[%s8874_s5 + $0x1e0] sm:$0xff] }
 0x309   :  { %v7654_v32 = vadd.f32 %v1618_v30, %v1617_v10  ;;  %v1717_v10 = vld [vmem:[%s8874_s5 + $0x170] sm:$0xff]  ;;  %v6600_v12 = vpack.c.bf16 %v1727_v8, %v1724_v7  ;;  %v1755_v7 = vld [vmem:[%s8874_s5 + $0x2a0] sm:$0xff] }
 0x30a   :  { %v6171_v33 = vpop.f32.mrb[60].mxu0  ;;  %v6588_v13 = vpack.c.bf16 %v1720_v11, %v1717_v10  ;;  %v1741_v30 = vld [vmem:[%s8874_s5 + $0x230] sm:$0xff]  ;;  %v1768_v11 = vld [vmem:[%s8874_s5 + $0x308] sm:$0xff] }
 0x30b   :  { %v1669_v36 = vsel %vm701_vm3, %v6171_v33, 0.0  ;;  %v1594_v37 = vpop.f32.mrb[61].mxu0  ;;  %5277 = vmatmul.mubr.msk.f32.vlgmr.msra.gmra.mrb[26].mxu1 %vm701_vm3, %v7654_v32  ;;  %6182 = vmatprep.mubr.msk.f32.mxu0 %vm701_vm3, %v7654_v32  ;;  %v6606_v33 = vpack.c.bf16 %v1734_v26, %v1731_v24  ;;  %v1761_v8 = vld [vmem:[%s8874_s5 + $0x2d0] sm:$0xff]  ;;  %v1772_v24 = vld [vmem:[%s8874_s5 + $0x328] sm:$0xff]  ;;  %v1774_v26 = vld [vmem:[%s8874_s5 + $0x338] sm:$0x1] }
 0x30c   :  { %v7667_v40 = vadd.f32 %v1669_v36, %v1668_v23  ;;  %v1652_v41 = vsel %vm701_vm3, %v1594_v37, 0.0  ;;  %6183 = vmatmul.mubr.msk.f32.vlgmr.msra.gmra.mrb[62].mxu0 %vm701_vm3, %v7651_v29  ;;  %6559 = vmatpush1.bf16.msra.mxu1 %v6558_v31  ;;  %v1723_v23 = vld [vmem:[%s8874_s5 + $0x1a0] sm:$0xff]  ;;  %v6594_v31 = vpack.c.bf16 %v1725_v22, %v1722_v20  ;;  %v1729_v36 = vld [vmem:[%s8874_s5 + $0x1d0] sm:$0x1]  ;;  %v6608_v37 = vpack.c.bf16 %v1741_v30, %v1738_v28  ;;  %v1758_v20 = vld [vmem:[%s8874_s5 + $0x2b8] sm:$0x1] }
 0x30d   :  { %v7672_v42 = vadd.f32 %v1652_v41, %v1651_v17  ;;  %6567 = vmatpush3.bf16.msra.mxu0 %v7590_v50  ;;  %2002 = vmatprep.mubr.f32.mxu1 %v7065_v49  ;;  %v1705_v50 = vld [vmem:[%s8874_s5 + $0x110] sm:$0xff]  ;;  %v1732_v17 = vld [vmem:[%s8874_s5 + $0x1e8] sm:$0xff]  ;;  %v6592_v21 = vpack.c.bf16 %v1726_v25, %v1723_v23  ;;  %v1759_v23 = vld [vmem:[%s8874_s5 + $0x2c0] sm:$0x1] }
 0x30e   :  { %6569 = vmatprep.subr.bf16.mxu0 %v6568_v34  ;;  %6561 = vmatprep.subr.bf16.mxu1 %v6560_v35  ;;  %v6572_v53 = vpack.c.bf16 %v1705_v50, %v1702_v45  ;;  %v6604_v27 = vpack.c.bf16 %v1735_v18, %v1732_v17  ;;  %v1740_v35 = vld [vmem:[%s8874_s5 + $0x228] sm:$0xff]  ;;  %v1739_v45 = vld [vmem:[%s8874_s5 + $0x220] sm:$0xff]  ;;  %v1742_v50 = vld [vmem:[%s8874_s5 + $0x238] sm:$0xff] }
 0x30f   :  { %5278 = vmatmul.mubr.msk.f32.gmra.mrb[28].mxu1 %vm701_vm3, %v7651_v29  ;;  %6185 = vmatprep.mubr.msk.f32.mxu0 %vm701_vm3, %v7672_v42  ;;  %v6616_v47 = vpack.c.bf16 %v1742_v50, %v1739_v45  ;;  %v1763_v17 = vld [vmem:[%s8874_s5 + $0x2e0] sm:$0xff]  ;;  %v1766_v18 = vld [vmem:[%s8874_s5 + $0x2f8] sm:$0xff]  ;;  %v1769_v22 = vld [vmem:[%s8874_s5 + $0x310] sm:$0xff] }
 0x310   :  { %6186 = vmatmul.mubr.msk.f32.gmra.mrb[64].mxu0 %vm701_vm3, %v7667_v40  ;;  %2008 = vmatprep.mubr.f32.mxu1 %v7065_v49  ;;  %v1778_v28 = vld [vmem:[%s8874_s5 + $0x358] sm:$0xff]  ;;  %v1781_v30 = vld [vmem:[%s8874_s5 + $0x370] sm:$0xff]  ;;  %v1783_v50 = vld [vmem:[%s8874_s5 + $0x380] sm:$0xff] }
 0x311   :  { %6571 = vmatpush3.bf16.msra.mxu0 %v6568_v34  ;;  %6198 = vmatprep.mubr.msk.f32.mxu0 %vm701_vm3, %v7654_v32  ;;  %v1737_v34 = vld [vmem:[%s8874_s5 + $0x210] sm:$0xff]  ;;  %v1790_v45 = vld [vmem:[%s8874_s5 + $0x3b8] sm:$0x1] }
 0x312   :  { %6563 = vmatpush1.bf16.msra.mxu1 %v6562_v43  ;;  %6196 = vmatprep.subr.msk.mxu0 %vm714_vm2, %v1700_v44  ;;  %v6610_v41 = vpack.c.bf16 %v1740_v35, %v1737_v34  ;;  %v1728_v43 = vld [vmem:[%s8874_s5 + $0x1c8] sm:$0x1]  ;;  %v1787_v35 = vld [vmem:[%s8874_s5 + $0x3a0] sm:$0xff] }
 0x313   :  { %5279 = vmatmul.mubr.msk.f32.gmra.mrb[30].mxu1 %vm701_vm3, %v7672_v42  ;;  %5286 = vmatprep.subr.msk.mxu1 %vm714_vm2, %v1699_v46  ;;  %v1744_v46 = vld [vmem:[%s8874_s5 + $0x248] sm:$0x1] }
 0x314   :  { %2014 = vmatprep.mubr.f32.mxu1 %v7065_v49  ;;  %v1784_v34 = vld [vmem:[%s8874_s5 + $0x388] sm:$0xff] }
 0x315   :  { %6197 = vmatpush3.msk.msra.mxu0 %vm714_vm2, %v1700_v44  ;;  %v6612_v44 = vpack.c.bf16 %v1736_v39, %v1733_v38  ;;  %v1780_v38 = vld [vmem:[%s8874_s5 + $0x368] sm:$0xff]  ;;  %v6664_v39 = vpack.c.bf16 %v1787_v35, %v1784_v34  ;;  %v1815_v34 = vld [vmem:[%s8874_s5 + $0x480] sm:$0xff]  ;;  %v1821_v35 = vld [vmem:[%s8874_s5 + $0x4b0] sm:$0xff] }
 0x316   :  { %6199 = vmatmul.mubr.msk.f32.vlgmr.msra.gmra.mrb[66].mxu0 %vm701_vm3, %v7651_v29  ;;  %6573 = vmatprep.subr.bf16.mxu0 %v6572_v53  ;;  %v6628_v53 = vpack.c.bf16 %v1751_v51, %v1748_v48  ;;  %v1795_v48 = vld [vmem:[%s8874_s5 + $0x3e0] sm:$0xff] }
 0x317   :  { %6201 = vmatprep.mubr.msk.f32.mxu0 %vm701_vm3, %v7672_v42  ;;  %6575 = vmatpush1.bf16.msra.mxu0 %v6574_v54  ;;  %v1754_v54 = vld [vmem:[%s8874_s5 + $0x298] sm:$0xff] }
 0x318   :  { %5280 = vmatmul.mubr.msk.f32.gmra.mrb[32].mxu1 %vm701_vm3, %v7667_v40  ;;  %6577 = vmatprep.subr.bf16.mxu0 %v6576_v57  ;;  %v1747_v57 = vld [vmem:[%s8874_s5 + $0x260] sm:$0xff]  ;;  %v6632_v59 = vpack.c.bf16 %v1757_v55, %v1754_v54  ;;  %v1785_v54 = vld [vmem:[%s8874_s5 + $0x390] sm:$0xff] }
 0x319   :  { %5287 = vmatpush1.msk.msra.mxu1 %vm714_vm2, %v1698_v60  ;;  %2179 = vmatprep.mubr.f32.mxu1 %v7065_v49  ;;  %v6620_v60 = vpack.c.bf16 %v1750_v58, %v1747_v57  ;;  %v1791_v55 = vld [vmem:[%s8874_s5 + $0x3c0] sm:$0xff]  ;;  %v1798_v58 = vld [vmem:[%s8874_s5 + $0x3f8] sm:$0xff] }
 0x31a   :  { %6202 = vmatmul.mubr.msk.f32.gmra.mrb[68].mxu0 %vm701_vm3, %v7667_v40  ;;  %6581 = vmatprep.subr.bf16.mxu1 %v6580_v61 }
 0x31b   :  { %6579 = vmatpush1.bf16.msra.mxu0 %v6578_v62  ;;  %2362 = vmatprep.mubr.f32.mxu0 %v7065_v49  ;;  %v1749_v62 = vld [vmem:[%s8874_s5 + $0x270] sm:$0xff] }
 0x31c   :  { %5288 = vmatmul.mubr.msk.f32.vlgmr.msra.gmra.mrb[34].mxu1 %vm701_vm3, %v7654_v32  ;;  %5297 = vmatprep.subr.msk.mxu0 %vm714_vm2, %v1714_v1  ;;  %v1756_v1 = vld [vmem:[%s8874_s5 + $0x2a8] sm:$0xff] }
 0x31d   :  { %6583 = vmatpush3.bf16.msra.mxu1 %v6580_v61  ;;  %2185 = vmatprep.mubr.f32.mxu1 %v7065_v49  ;;  %v1746_v61 = vld [vmem:[%s8874_s5 + $0x258] sm:$0xff] }
 0x31e   :  { %6585 = vmatprep.subr.bf16.mxu1 %v6584_v2  ;;  %v6622_v4 = vpack.c.bf16 %v1749_v62, %v1746_v61  ;;  %v1797_v62 = vld [vmem:[%s8874_s5 + $0x3f0] sm:$0xff] }
 0x31f   :  { %5298 = vmatpush1.msk.msra.mxu0 %vm714_vm2, %v1713_v5  ;;  %v1752_v5 = vld [vmem:[%s8874_s5 + $0x288] sm:$0xff] }
 0x320   :  { %5289 = vmatmul.mubr.msk.f32.gmra.mrb[36].mxu1 %vm701_vm3, %v7651_v29  ;;  %5299 = vmatmul.mubr.msk.f32.vlgmr.msra.gmra.mrb[70].mxu0 %vm701_vm3, %v7654_v32 }
 0x321   :  { %2191 = vmatprep.mubr.f32.mxu1 %v7065_v49  ;;  %2368 = vmatprep.mubr.f32.mxu0 %v7065_v49 }
 0x322   :  { %6587 = vmatpush3.bf16.msra.mxu1 %v6584_v2  ;;  %6597 = vmatprep.subr.bf16.mxu0 %v6596_v6  ;;  %v1762_v2 = vld [vmem:[%s8874_s5 + $0x2d8] sm:$0xff] }
 0x323   :  { %6599 = vmatpush3.bf16.msra.mxu0 %v6596_v6  ;;  %6212 = vmatprep.subr.msk.mxu1 %vm714_vm2, %v1715_v9  ;;  %v6624_v6 = vpack.c.bf16 %v1756_v1, %v1753_v0  ;;  %v6636_v10 = vpack.c.bf16 %v1765_v3, %v1762_v2  ;;  %v1789_v0 = vld [vmem:[%s8874_s5 + $0x3b0] sm:$0x1]  ;;  %v1796_v3 = vld [vmem:[%s8874_s5 + $0x3e8] sm:$0xff] }
 0x324   :  { %5290 = vmatmul.mubr.msk.f32.gmra.mrb[38].mxu1 %vm701_vm3, %v7672_v42  ;;  %5300 = vmatmul.mubr.msk.f32.gmra.mrb[72].mxu0 %vm701_vm3, %v7651_v29  ;;  %v1793_v2 = vld [vmem:[%s8874_s5 + $0x3d0] sm:$0xff] }
 0x325   :  { %2197 = vmatprep.mubr.f32.mxu1 %v7065_v49  ;;  %2374 = vmatprep.mubr.f32.mxu0 %v7065_v49 }
 0x326   :  { %6213 = vmatpush3.msk.msra.mxu1 %vm714_vm2, %v1715_v9  ;;  %6601 = vmatprep.subr.bf16.mxu0 %v6600_v12  ;;  %v1764_v9 = vld [vmem:[%s8874_s5 + $0x2e8] sm:$0xff] }
 0x327   :  { %6603 = vmatpush3.bf16.msra.mxu0 %v6600_v12  ;;  %6589 = vmatprep.subr.bf16.mxu1 %v6588_v13  ;;  %v1771_v12 = vld [vmem:[%s8874_s5 + $0x320] sm:$0xff]  ;;  %v6626_v13 = vpack.c.bf16 %v1755_v7, %v1752_v5  ;;  %v6638_v14 = vpack.c.bf16 %v1764_v9, %v1761_v8  ;;  %v1788_v5 = vld [vmem:[%s8874_s5 + $0x3a8] sm:$0x1]  ;;  %v1802_v8 = vld [vmem:[%s8874_s5 + $0x418] sm:$0xff] }
 0x328   :  { %5291 = vmatmul.mubr.msk.f32.gmra.mrb[40].mxu1 %vm701_vm3, %v7667_v40  ;;  %5301 = vmatmul.mubr.msk.f32.gmra.mrb[74].mxu0 %vm701_vm3, %v7672_v42  ;;  %v6640_v25 = vpack.c.bf16 %v1771_v12, %v1768_v11  ;;  %v1799_v7 = vld [vmem:[%s8874_s5 + $0x400] sm:$0xff]  ;;  %v1804_v9 = vld [vmem:[%s8874_s5 + $0x428] sm:$0x1] }
 0x329   :  { %6214 = vmatprep.mubr.msk.f32.mxu1 %vm701_vm3, %v7654_v32  ;;  %2380 = vmatprep.mubr.f32.mxu0 %v7065_v49  ;;  %v1808_v11 = vld [vmem:[%s8874_s5 + $0x448] sm:$0xff]  ;;  %v1811_v12 = vld [vmem:[%s8874_s5 + $0x460] sm:$0xff] }
 0x32a   :  { %6228 = vmatprep.subr.msk.mxu0 %vm714_vm2, %v1730_v16 }
 0x32b   :  { %6229 = vmatpush3.msk.msra.mxu0 %vm714_vm2, %v1730_v16  ;;  %v1770_v16 = vld [vmem:[%s8874_s5 + $0x318] sm:$0xff] }
 0x32c   :  { %5302 = vmatmul.mubr.msk.f32.gmra.mrb[76].mxu0 %vm701_vm3, %v7667_v40  ;;  %6215 = vmatmul.mubr.msk.f32.vlgmr.msra.gmra.mrb[42].mxu1 %vm701_vm3, %v7651_v29 }
 0x32d   :  { %6591 = vmatpush1.bf16.msra.mxu1 %v6590_v19  ;;  %6217 = vmatprep.mubr.msk.f32.mxu1 %vm701_vm3, %v7672_v42  ;;  %v6642_v19 = vpack.c.bf16 %v1770_v16, %v1767_v15  ;;  %v1814_v15 = vld [vmem:[%s8874_s5 + $0x478] sm:$0xff]  ;;  %v1817_v16 = vld [vmem:[%s8874_s5 + $0x490] sm:$0xff] }
 0x32e   :  { %6230 = vmatprep.mubr.msk.f32.mxu0 %vm701_vm3, %v7654_v32  ;;  %6593 = vmatprep.subr.bf16.mxu1 %v6592_v21  ;;  %v6644_v21 = vpack.c.bf16 %v1766_v18, %v1763_v17  ;;  %v1810_v17 = vld [vmem:[%s8874_s5 + $0x458] sm:$0xff]  ;;  %v6696_v18 = vpack.c.bf16 %v1817_v16, %v1814_v15  ;;  %v1845_v15 = vld [vmem:[%s8874_s5 + $0x570] sm:$0xff]  ;;  %v1851_v16 = vld [vmem:[%s8874_s5 + $0x5a0] sm:$0xff] }
 0x32f   :  { %6605 = vmatprep.subr.bf16.mxu0 %v6604_v27  ;;  %v6648_v27 = vpack.c.bf16 %v1772_v24, %v1769_v22  ;;  %v1820_v22 = vld [vmem:[%s8874_s5 + $0x4a8] sm:$0x1]  ;;  %v1813_v24 = vld [vmem:[%s8874_s5 + $0x470] sm:$0xff] }
 0x330   :  { %6218 = vmatmul.mubr.msk.f32.gmra.mrb[44].mxu1 %vm701_vm3, %v7667_v40  ;;  %6231 = vmatmul.mubr.msk.f32.vlgmr.msra.gmra.mrb[78].mxu0 %vm701_vm3, %v7651_v29 }
 0x331   :  { %6595 = vmatpush1.bf16.msra.mxu1 %v6594_v31  ;;  %6607 = vmatpush1.bf16.msra.mxu0 %v6606_v33  ;;  %v1773_v31 = vld [vmem:[%s8874_s5 + $0x330] sm:$0x1]  ;;  %v6660_v33 = vpack.c.bf16 %v1781_v30, %v1778_v28 }
 0x332   :  { %6233 = vmatprep.mubr.msk.f32.mxu0 %vm701_vm3, %v7672_v42  ;;  %5308 = vmatprep.subr.msk.mxu1 %vm714_vm2, %v1729_v36  ;;  %v1775_v36 = vld [vmem:[%s8874_s5 + $0x340] sm:$0x1]  ;;  %v1825_v28 = vld [vmem:[%s8874_s5 + $0x4d0] sm:$0xff] }
 0x333   :  { %6609 = vmatprep.subr.bf16.mxu0 %v6608_v37  ;;  %2545 = vmatprep.mubr.f32.mxu1 %v7065_v49  ;;  %v1777_v37 = vld [vmem:[%s8874_s5 + $0x350] sm:$0xff] }
 0x334   :  { %6234 = vmatmul.mubr.msk.f32.gmra.mrb[80].mxu0 %vm701_vm3, %v7667_v40 }
 0x335   :  { %5309 = vmatpush1.msk.msra.mxu1 %vm714_vm2, %v1728_v43  ;;  %6611 = vmatpush1.bf16.msra.mxu0 %v6610_v41  ;;  %v6652_v41 = vpack.c.bf16 %v1780_v38, %v1777_v37  ;;  %v1776_v43 = vld [vmem:[%s8874_s5 + $0x348] sm:$0xff] }
 0x336   :  { %5310 = vmatmul.mubr.msk.f32.vlgmr.msra.gmra.mrb[46].mxu1 %vm701_vm3, %v7654_v32  ;;  %6613 = vmatprep.subr.bf16.mxu1 %v6612_v44  ;;  %v1828_v38 = vld [vmem:[%s8874_s5 + $0x4e8] sm:$0xff] }
 0x337   :  { %6615 = vmatpush3.bf16.msra.mxu1 %v6612_v44  ;;  %5319 = vmatprep.subr.msk.mxu0 %vm714_vm2, %v1744_v46  ;;  %v1779_v44 = vld [vmem:[%s8874_s5 + $0x360] sm:$0xff]  ;;  %v1786_v46 = vld [vmem:[%s8874_s5 + $0x398] sm:$0xff] }
 0x338   :  { %2551 = vmatprep.mubr.f32.mxu1 %v7065_v49  ;;  %2728 = vmatprep.mubr.f32.mxu0 %v7065_v49  ;;  %v6654_v51 = vpack.c.bf16 %v1779_v44, %v1776_v43  ;;  %v1827_v44 = vld [vmem:[%s8874_s5 + $0x4e0] sm:$0xff] }
 0x339   :  { %5320 = vmatpush1.msk.msra.mxu0 %vm714_vm2, %v1743_v52  ;;  %6617 = vmatprep.subr.bf16.mxu1 %v6616_v47  ;;  %v1782_v52 = vld [vmem:[%s8874_s5 + $0x378] sm:$0xff] }
 0x33a   :  { %5311 = vmatmul.mubr.msk.f32.gmra.mrb[48].mxu1 %vm701_vm3, %v7651_v29  ;;  %5321 = vmatmul.mubr.msk.f32.vlgmr.msra.gmra.mrb[82].mxu0 %vm701_vm3, %v7654_v32 }
 0x33b   :  { %2557 = vmatprep.mubr.f32.mxu1 %v7065_v49  ;;  %2734 = vmatprep.mubr.f32.mxu0 %v7065_v49 }
 0x33c   :  { %6619 = vmatpush3.bf16.msra.mxu1 %v6616_v47  ;;  %6629 = vmatprep.subr.bf16.mxu0 %v6628_v53  ;;  %v1792_v47 = vld [vmem:[%s8874_s5 + $0x3c8] sm:$0xff] }
 0x33d   :  { %6631 = vmatpush3.bf16.msra.mxu0 %v6628_v53  ;;  %6244 = vmatprep.subr.msk.mxu1 %vm714_vm2, %v1745_v56  ;;  %v6656_v53 = vpack.c.bf16 %v1786_v46, %v1783_v50  ;;  %v6668_v57 = vpack.c.bf16 %v1795_v48, %v1792_v47  ;;  %v1819_v50 = vld [vmem:[%s8874_s5 + $0x4a0] sm:$0x1]  ;;  %v1826_v48 = vld [vmem:[%s8874_s5 + $0x4d8] sm:$0xff] }
 0x33e   :  { %5312 = vmatmul.mubr.msk.f32.gmra.mrb[50].mxu1 %vm701_vm3, %v7672_v42  ;;  %5322 = vmatmul.mubr.msk.f32.gmra.mrb[84].mxu0 %vm701_vm3, %v7651_v29  ;;  %v1823_v47 = vld [vmem:[%s8874_s5 + $0x4c0] sm:$0xff] }
 0x33f   :  { %2563 = vmatprep.mubr.f32.mxu1 %v7065_v49  ;;  %2740 = vmatprep.mubr.f32.mxu0 %v7065_v49 }
 0x340   :  { %6245 = vmatpush3.msk.msra.mxu1 %vm714_vm2, %v1745_v56  ;;  %6633 = vmatprep.subr.bf16.mxu0 %v6632_v59  ;;  %v1794_v56 = vld [vmem:[%s8874_s5 + $0x3d8] sm:$0xff] }
 0x341   :  { %6635 = vmatpush3.bf16.msra.mxu0 %v6632_v59  ;;  %6621 = vmatprep.subr.bf16.mxu1 %v6620_v60  ;;  %v1801_v59 = vld [vmem:[%s8874_s5 + $0x410] sm:$0xff]  ;;  %v6658_v60 = vpack.c.bf16 %v1785_v54, %v1782_v52  ;;  %v6670_v61 = vpack.c.bf16 %v1794_v56, %v1791_v55  ;;  %v1818_v52 = vld [vmem:[%s8874_s5 + $0x498] sm:$0x1]  ;;  %v1832_v55 = vld [vmem:[%s8874_s5 + $0x508] sm:$0xff] }
 0x342   :  { %5313 = vmatmul.mubr.msk.f32.gmra.mrb[52].mxu1 %vm701_vm3, %v7667_v40  ;;  %5323 = vmatmul.mubr.msk.f32.gmra.mrb[86].mxu0 %vm701_vm3, %v7672_v42  ;;  %v6672_v1 = vpack.c.bf16 %v1801_v59, %v1798_v58  ;;  %v1829_v54 = vld [vmem:[%s8874_s5 + $0x4f0] sm:$0xff]  ;;  %v1834_v56 = vld [vmem:[%s8874_s5 + $0x518] sm:$0x1] }
 0x343   :  { %6246 = vmatprep.mubr.msk.f32.mxu1 %vm701_vm3, %v7654_v32  ;;  %2746 = vmatprep.mubr.f32.mxu0 %v7065_v49  ;;  %v1838_v58 = vld [vmem:[%s8874_s5 + $0x538] sm:$0xff]  ;;  %v1841_v59 = vld [vmem:[%s8874_s5 + $0x550] sm:$0xff] }
 0x344   :  { %6260 = vmatprep.subr.msk.mxu0 %vm714_vm2, %v1760_v63 }
 0x345   :  { %6261 = vmatpush3.msk.msra.mxu0 %vm714_vm2, %v1760_v63  ;;  %v1800_v63 = vld [vmem:[%s8874_s5 + $0x408] sm:$0xff] }
 0x346   :  { %5324 = vmatmul.mubr.msk.f32.gmra.mrb[88].mxu0 %vm701_vm3, %v7667_v40  ;;  %6247 = vmatmul.mubr.msk.f32.vlgmr.msra.gmra.mrb[54].mxu1 %vm701_vm3, %v7651_v29 }
 0x347   :  { %6623 = vmatpush1.bf16.msra.mxu1 %v6622_v4  ;;  %6249 = vmatprep.mubr.msk.f32.mxu1 %vm701_vm3, %v7672_v42  ;;  %v6674_v4 = vpack.c.bf16 %v1800_v63, %v1797_v62  ;;  %v1844_v62 = vld [vmem:[%s8874_s5 + $0x568] sm:$0xff]  ;;  %v1847_v63 = vld [vmem:[%s8874_s5 + $0x580] sm:$0xff] }
 0x348   :  { %6262 = vmatprep.mubr.msk.f32.mxu0 %vm701_vm3, %v7654_v32  ;;  %6625 = vmatprep.subr.bf16.mxu1 %v6624_v6  ;;  %v6676_v6 = vpack.c.bf16 %v1796_v3, %v1793_v2  ;;  %v1840_v2 = vld [vmem:[%s8874_s5 + $0x548] sm:$0xff]  ;;  %v6728_v3 = vpack.c.bf16 %v1847_v63, %v1844_v62  ;;  %v1875_v62 = vld [vmem:[%s8874_s5 + $0x660] sm:$0xff]  ;;  %v1881_v63 = vld [vmem:[%s8874_s5 + $0x690] sm:$0xff] }
 0x349   :  { %6637 = vmatprep.subr.bf16.mxu0 %v6636_v10  ;;  %v6680_v10 = vpack.c.bf16 %v1802_v8, %v1799_v7  ;;  %v1850_v7 = vld [vmem:[%s8874_s5 + $0x598] sm:$0x1]  ;;  %v1843_v8 = vld [vmem:[%s8874_s5 + $0x560] sm:$0xff] }
 0x34a   :  { %6250 = vmatmul.mubr.msk.f32.gmra.mrb[56].mxu1 %vm701_vm3, %v7667_v40  ;;  %6263 = vmatmul.mubr.msk.f32.vlgmr.msra.gmra.mrb[90].mxu0 %vm701_vm3, %v7651_v29 }
 0x34b   :  { %6627 = vmatpush1.bf16.msra.mxu1 %v6626_v13  ;;  %6639 = vmatpush1.bf16.msra.mxu0 %v6638_v14  ;;  %v1803_v13 = vld [vmem:[%s8874_s5 + $0x420] sm:$0x1]  ;;  %v6692_v14 = vpack.c.bf16 %v1811_v12, %v1808_v11 }
 0x34c   :  { %6265 = vmatprep.mubr.msk.f32.mxu0 %vm701_vm3, %v7672_v42  ;;  %5330 = vmatprep.subr.msk.mxu1 %vm714_vm2, %v1759_v23  ;;  %v1805_v23 = vld [vmem:[%s8874_s5 + $0x430] sm:$0x1]  ;;  %v1855_v11 = vld [vmem:[%s8874_s5 + $0x5c0] sm:$0xff] }
 0x34d   :  { %6641 = vmatprep.subr.bf16.mxu0 %v6640_v25  ;;  %2911 = vmatprep.mubr.f32.mxu1 %v7065_v49  ;;  %v1807_v25 = vld [vmem:[%s8874_s5 + $0x440] sm:$0xff] }
 0x34e   :  { %6266 = vmatmul.mubr.msk.f32.gmra.mrb[92].mxu0 %vm701_vm3, %v7667_v40 }
 0x34f   :  { %5331 = vmatpush1.msk.msra.mxu1 %vm714_vm2, %v1758_v20  ;;  %6643 = vmatpush1.bf16.msra.mxu0 %v6642_v19  ;;  %v6684_v19 = vpack.c.bf16 %v1810_v17, %v1807_v25  ;;  %v1806_v20 = vld [vmem:[%s8874_s5 + $0x438] sm:$0xff] }
 0x350   :  { %5332 = vmatmul.mubr.msk.f32.vlgmr.msra.gmra.mrb[58].mxu1 %vm701_vm3, %v7654_v32  ;;  %6645 = vmatprep.subr.bf16.mxu1 %v6644_v21  ;;  %v1858_v17 = vld [vmem:[%s8874_s5 + $0x5d8] sm:$0xff] }
 0x351   :  { %6647 = vmatpush3.bf16.msra.mxu1 %v6644_v21  ;;  %5341 = vmatprep.subr.msk.mxu0 %vm714_vm2, %v1774_v26  ;;  %v1809_v21 = vld [vmem:[%s8874_s5 + $0x450] sm:$0xff]  ;;  %v1816_v26 = vld [vmem:[%s8874_s5 + $0x488] sm:$0xff] }
 0x352   :  { %2917 = vmatprep.mubr.f32.mxu1 %v7065_v49  ;;  %3094 = vmatprep.mubr.f32.mxu0 %v7065_v49  ;;  %v6686_v30 = vpack.c.bf16 %v1809_v21, %v1806_v20  ;;  %v1857_v21 = vld [vmem:[%s8874_s5 + $0x5d0] sm:$0xff] }
 0x353   :  { %5342 = vmatpush1.msk.msra.mxu0 %vm714_vm2, %v1773_v31  ;;  %6649 = vmatprep.subr.bf16.mxu1 %v6648_v27  ;;  %v1812_v31 = vld [vmem:[%s8874_s5 + $0x468] sm:$0xff] }
 0x354   :  { %5333 = vmatmul.mubr.msk.f32.gmra.mrb[60].mxu1 %vm701_vm3, %v7651_v29  ;;  %5343 = vmatmul.mubr.msk.f32.vlgmr.msra.gmra.mrb[94].mxu0 %vm701_vm3, %v7654_v32 }
 0x355   :  { %2923 = vmatprep.mubr.f32.mxu1 %v7065_v49  ;;  %3100 = vmatprep.mubr.f32.mxu0 %v7065_v49 }
 0x356   :  { %6651 = vmatpush3.bf16.msra.mxu1 %v6648_v27  ;;  %6661 = vmatprep.subr.bf16.mxu0 %v6660_v33  ;;  %v1822_v27 = vld [vmem:[%s8874_s5 + $0x4b8] sm:$0xff] }
 0x357   :  { %6663 = vmatpush3.bf16.msra.mxu0 %v6660_v33  ;;  %6276 = vmatprep.subr.msk.mxu1 %vm714_vm2, %v1775_v36  ;;  %v6688_v33 = vpack.c.bf16 %v1816_v26, %v1813_v24  ;;  %v6700_v37 = vpack.c.bf16 %v1825_v28, %v1822_v27  ;;  %v1849_v24 = vld [vmem:[%s8874_s5 + $0x590] sm:$0x1]  ;;  %v1856_v28 = vld [vmem:[%s8874_s5 + $0x5c8] sm:$0xff] }
 0x358   :  { %5334 = vmatmul.mubr.msk.f32.gmra.mrb[62].mxu1 %vm701_vm3, %v7672_v42  ;;  %5344 = vmatmul.mubr.msk.f32.gmra.mrb[96].mxu0 %vm701_vm3, %v7651_v29  ;;  %v1853_v27 = vld [vmem:[%s8874_s5 + $0x5b0] sm:$0xff] }
 0x359   :  { %2929 = vmatprep.mubr.f32.mxu1 %v7065_v49  ;;  %3106 = vmatprep.mubr.f32.mxu0 %v7065_v49 }
 0x35a   :  { %6277 = vmatpush3.msk.msra.mxu1 %vm714_vm2, %v1775_v36  ;;  %6665 = vmatprep.subr.bf16.mxu0 %v6664_v39  ;;  %v1824_v36 = vld [vmem:[%s8874_s5 + $0x4c8] sm:$0xff] }
 0x35b   :  { %6667 = vmatpush3.bf16.msra.mxu0 %v6664_v39  ;;  %6653 = vmatprep.subr.bf16.mxu1 %v6652_v41  ;;  %v1831_v39 = vld [vmem:[%s8874_s5 + $0x500] sm:$0xff]  ;;  %v6690_v41 = vpack.c.bf16 %v1815_v34, %v1812_v31  ;;  %v6702_v43 = vpack.c.bf16 %v1824_v36, %v1821_v35  ;;  %v1848_v31 = vld [vmem:[%s8874_s5 + $0x588] sm:$0x1]  ;;  %v1862_v35 = vld [vmem:[%s8874_s5 + $0x5f8] sm:$0xff] }
 0x35c   :  { %5335 = vmatmul.mubr.msk.f32.gmra.mrb[64].mxu1 %vm701_vm3, %v7667_v40  ;;  %5345 = vmatmul.mubr.msk.f32.gmra.mrb[98].mxu0 %vm701_vm3, %v7672_v42  ;;  %v6704_v46 = vpack.c.bf16 %v1831_v39, %v1828_v38  ;;  %v1859_v34 = vld [vmem:[%s8874_s5 + $0x5e0] sm:$0xff]  ;;  %v1864_v36 = vld [vmem:[%s8874_s5 + $0x608] sm:$0x1] }
 0x35d   :  { %6278 = vmatprep.mubr.msk.f32.mxu1 %vm701_vm3, %v7654_v32  ;;  %3112 = vmatprep.mubr.f32.mxu0 %v7065_v49  ;;  %v1868_v38 = vld [vmem:[%s8874_s5 + $0x628] sm:$0xff]  ;;  %v1871_v39 = vld [vmem:[%s8874_s5 + $0x640] sm:$0xff] }
 0x35e   :  { %6292 = vmatprep.subr.msk.mxu0 %vm714_vm2, %v1790_v45 }
 0x35f   :  { %6293 = vmatpush3.msk.msra.mxu0 %vm714_vm2, %v1790_v45  ;;  %v1830_v45 = vld [vmem:[%s8874_s5 + $0x4f8] sm:$0xff] }
 0x360   :  { %5346 = vmatmul.mubr.msk.f32.gmra.mrb[100].mxu0 %vm701_vm3, %v7667_v40  ;;  %6279 = vmatmul.mubr.msk.f32.vlgmr.msra.gmra.mrb[66].mxu1 %vm701_vm3, %v7651_v29 }
 0x361   :  { %6655 = vmatpush1.bf16.msra.mxu1 %v6654_v51  ;;  %6281 = vmatprep.mubr.msk.f32.mxu1 %vm701_vm3, %v7672_v42  ;;  %v6706_v51 = vpack.c.bf16 %v1830_v45, %v1827_v44  ;;  %v1874_v44 = vld [vmem:[%s8874_s5 + $0x658] sm:$0xff]  ;;  %v1877_v45 = vld [vmem:[%s8874_s5 + $0x670] sm:$0xff] }
 0x362   :  { %6294 = vmatprep.mubr.msk.f32.mxu0 %vm701_vm3, %v7654_v32  ;;  %6657 = vmatprep.subr.bf16.mxu1 %v6656_v53  ;;  %v6708_v53 = vpack.c.bf16 %v1826_v48, %v1823_v47  ;;  %v1870_v47 = vld [vmem:[%s8874_s5 + $0x638] sm:$0xff]  ;;  %v6760_v48 = vpack.c.bf16 %v1877_v45, %v1874_v44  ;;  %v1909_v44 = vld [vmem:[%s8874_s5 + $0x770] sm:$0x1]  ;;  %v7066_v45 = vmov 1983009808  }
 0x363   :  { %6669 = vmatprep.subr.bf16.mxu0 %v6668_v57  ;;  %v6712_v57 = vpack.c.bf16 %v1832_v55, %v1829_v54  ;;  %v1880_v54 = vld [vmem:[%s8874_s5 + $0x688] sm:$0x1]  ;;  %v1873_v55 = vld [vmem:[%s8874_s5 + $0x650] sm:$0xff] }
 0x364   :  { %6282 = vmatmul.mubr.msk.f32.gmra.mrb[68].mxu1 %vm701_vm3, %v7667_v40  ;;  %6295 = vmatmul.mubr.msk.f32.vlgmr.msra.gmra.mrb[102].mxu0 %vm701_vm3, %v7651_v29 }
 0x365   :  { %6659 = vmatpush1.bf16.msra.mxu1 %v6658_v60  ;;  %6671 = vmatpush1.bf16.msra.mxu0 %v6670_v61  ;;  %v1833_v60 = vld [vmem:[%s8874_s5 + $0x510] sm:$0x1]  ;;  %v6724_v61 = vpack.c.bf16 %v1841_v59, %v1838_v58 }
 0x366   :  { %6297 = vmatprep.mubr.msk.f32.mxu0 %vm701_vm3, %v7672_v42  ;;  %5352 = vmatprep.subr.msk.mxu1 %vm714_vm2, %v1789_v0  ;;  %v1835_v0 = vld [vmem:[%s8874_s5 + $0x520] sm:$0x1]  ;;  %v1885_v58 = vld [vmem:[%s8874_s5 + $0x6b0] sm:$0xff] }
 0x367   :  { %6673 = vmatprep.subr.bf16.mxu0 %v6672_v1  ;;  %3277 = vmatprep.mubr.f32.mxu1 %v7065_v49  ;;  %v1837_v1 = vld [vmem:[%s8874_s5 + $0x530] sm:$0xff] }
 0x368   :  { %6298 = vmatmul.mubr.msk.f32.gmra.mrb[104].mxu0 %vm701_vm3, %v7667_v40 }
 0x369   :  { %5353 = vmatpush1.msk.msra.mxu1 %vm714_vm2, %v1788_v5  ;;  %6675 = vmatpush1.bf16.msra.mxu0 %v6674_v4  ;;  %v6716_v4 = vpack.c.bf16 %v1840_v2, %v1837_v1  ;;  %v1836_v5 = vld [vmem:[%s8874_s5 + $0x528] sm:$0xff] }
 0x36a   :  { %5354 = vmatmul.mubr.msk.f32.vlgmr.msra.gmra.mrb[70].mxu1 %vm701_vm3, %v7654_v32  ;;  %6677 = vmatprep.subr.bf16.mxu1 %v6676_v6  ;;  %v1888_v2 = vld [vmem:[%s8874_s5 + $0x6c8] sm:$0xff] }
 0x36b   :  { %6679 = vmatpush3.bf16.msra.mxu1 %v6676_v6  ;;  %5363 = vmatprep.subr.msk.mxu0 %vm714_vm2, %v1804_v9  ;;  %v1839_v6 = vld [vmem:[%s8874_s5 + $0x540] sm:$0xff]  ;;  %v1846_v9 = vld [vmem:[%s8874_s5 + $0x578] sm:$0xff] }
 0x36c   :  { %3283 = vmatprep.mubr.f32.mxu1 %v7065_v49  ;;  %3460 = vmatprep.mubr.f32.mxu0 %v7065_v49  ;;  %v6718_v12 = vpack.c.bf16 %v1839_v6, %v1836_v5  ;;  %v1887_v6 = vld [vmem:[%s8874_s5 + $0x6c0] sm:$0xff] }
 0x36d   :  { %5364 = vmatpush1.msk.msra.mxu0 %vm714_vm2, %v1803_v13  ;;  %6681 = vmatprep.subr.bf16.mxu1 %v6680_v10  ;;  %v1842_v13 = vld [vmem:[%s8874_s5 + $0x558] sm:$0xff] }
 0x36e   :  { %5355 = vmatmul.mubr.msk.f32.gmra.mrb[72].mxu1 %vm701_vm3, %v7651_v29  ;;  %5365 = vmatmul.mubr.msk.f32.vlgmr.msra.gmra.mrb[106].mxu0 %vm701_vm3, %v7654_v32 }
 0x36f   :  { %3289 = vmatprep.mubr.f32.mxu1 %v7065_v49  ;;  %3466 = vmatprep.mubr.f32.mxu0 %v7065_v49 }
 0x370   :  { %6683 = vmatpush3.bf16.msra.mxu1 %v6680_v10  ;;  %6693 = vmatprep.subr.bf16.mxu0 %v6692_v14  ;;  %v1852_v10 = vld [vmem:[%s8874_s5 + $0x5a8] sm:$0xff] }
 0x371   :  { %6695 = vmatpush3.bf16.msra.mxu0 %v6692_v14  ;;  %6308 = vmatprep.subr.msk.mxu1 %vm714_vm2, %v1805_v23  ;;  %v6720_v14 = vpack.c.bf16 %v1846_v9, %v1843_v8  ;;  %v6732_v25 = vpack.c.bf16 %v1855_v11, %v1852_v10  ;;  %v1879_v8 = vld [vmem:[%s8874_s5 + $0x680] sm:$0x1]  ;;  %v1886_v11 = vld [vmem:[%s8874_s5 + $0x6b8] sm:$0xff] }
 0x372   :  { %5356 = vmatmul.mubr.msk.f32.gmra.mrb[74].mxu1 %vm701_vm3, %v7672_v42  ;;  %5366 = vmatmul.mubr.msk.f32.gmra.mrb[108].mxu0 %vm701_vm3, %v7651_v29  ;;  %v1883_v10 = vld [vmem:[%s8874_s5 + $0x6a0] sm:$0xff] }
 0x373   :  { %3295 = vmatprep.mubr.f32.mxu1 %v7065_v49  ;;  %3472 = vmatprep.mubr.f32.mxu0 %v7065_v49 }
 0x374   :  { %6309 = vmatpush3.msk.msra.mxu1 %vm714_vm2, %v1805_v23  ;;  %6697 = vmatprep.subr.bf16.mxu0 %v6696_v18  ;;  %v1854_v23 = vld [vmem:[%s8874_s5 + $0x5b8] sm:$0xff] }
 0x375   :  { %6699 = vmatpush3.bf16.msra.mxu0 %v6696_v18  ;;  %6685 = vmatprep.subr.bf16.mxu1 %v6684_v19  ;;  %v1861_v18 = vld [vmem:[%s8874_s5 + $0x5f0] sm:$0xff]  ;;  %v6722_v19 = vpack.c.bf16 %v1845_v15, %v1842_v13  ;;  %v6734_v20 = vpack.c.bf16 %v1854_v23, %v1851_v16  ;;  %v1878_v13 = vld [vmem:[%s8874_s5 + $0x678] sm:$0x1]  ;;  %v1892_v16 = vld [vmem:[%s8874_s5 + $0x6e8] sm:$0xff] }
 0x376   :  { %5357 = vmatmul.mubr.msk.f32.gmra.mrb[76].mxu1 %vm701_vm3, %v7667_v40  ;;  %5367 = vmatmul.mubr.msk.f32.gmra.mrb[110].mxu0 %vm701_vm3, %v7672_v42  ;;  %v6736_v26 = vpack.c.bf16 %v1861_v18, %v1858_v17  ;;  %v1889_v15 = vld [vmem:[%s8874_s5 + $0x6d0] sm:$0xff]  ;;  %v1894_v23 = vld [vmem:[%s8874_s5 + $0x6f8] sm:$0x1] }
 0x377   :  { %6310 = vmatprep.mubr.msk.f32.mxu1 %vm701_vm3, %v7654_v32  ;;  %3478 = vmatprep.mubr.f32.mxu0 %v7065_v49  ;;  %v1898_v17 = vld [vmem:[%s8874_s5 + $0x718] sm:$0xff]  ;;  %v1901_v18 = vld [vmem:[%s8874_s5 + $0x730] sm:$0xff] }
 0x378   :  { %6324 = vmatprep.subr.msk.mxu0 %vm714_vm2, %v1820_v22 }
 0x379   :  { %6325 = vmatpush3.msk.msra.mxu0 %vm714_vm2, %v1820_v22  ;;  %v1860_v22 = vld [vmem:[%s8874_s5 + $0x5e8] sm:$0xff] }
 0x37a   :  { %5368 = vmatmul.mubr.msk.f32.gmra.mrb[112].mxu0 %vm701_vm3, %v7667_v40  ;;  %6311 = vmatmul.mubr.msk.f32.vlgmr.msra.gmra.mrb[78].mxu1 %vm701_vm3, %v7651_v29 }
 0x37b   :  { %6687 = vmatpush1.bf16.msra.mxu1 %v6686_v30  ;;  %6313 = vmatprep.mubr.msk.f32.mxu1 %vm701_vm3, %v7672_v42  ;;  %v6738_v30 = vpack.c.bf16 %v1860_v22, %v1857_v21  ;;  %v1904_v21 = vld [vmem:[%s8874_s5 + $0x748] sm:$0xff]  ;;  %v1907_v22 = vld [vmem:[%s8874_s5 + $0x760] sm:$0xff] }
 0x37c   :  { %6326 = vmatprep.mubr.msk.f32.mxu0 %vm701_vm3, %v7654_v32  ;;  %6689 = vmatprep.subr.bf16.mxu1 %v6688_v33  ;;  %v6740_v33 = vpack.c.bf16 %v1856_v28, %v1853_v27  ;;  %v1900_v27 = vld [vmem:[%s8874_s5 + $0x728] sm:$0xff]  ;;  %v6792_v28 = vpack.c.bf16 %v1907_v22, %v1904_v21 }
 0x37d   :  { %6701 = vmatprep.subr.bf16.mxu0 %v6700_v37  ;;  %v6744_v37 = vpack.c.bf16 %v1862_v35, %v1859_v34  ;;  %v1910_v34 = vld [vmem:[%s8874_s5 + $0x778] sm:$0x1]  ;;  %v1903_v35 = vld [vmem:[%s8874_s5 + $0x740] sm:$0xff] }
 0x37e   :  { %6314 = vmatmul.mubr.msk.f32.gmra.mrb[80].mxu1 %vm701_vm3, %v7667_v40  ;;  %6327 = vmatmul.mubr.msk.f32.vlgmr.msra.gmra.mrb[114].mxu0 %vm701_vm3, %v7651_v29 }
 0x37f   :  { %6691 = vmatpush1.bf16.msra.mxu1 %v6690_v41  ;;  %6703 = vmatpush1.bf16.msra.mxu0 %v6702_v43  ;;  %v1863_v41 = vld [vmem:[%s8874_s5 + $0x600] sm:$0x1]  ;;  %v6756_v43 = vpack.c.bf16 %v1871_v39, %v1868_v38  ;;  %v1902_v39 = vld [vmem:[%s8874_s5 + $0x738] sm:$0xff] }
 0x380   :  { %6329 = vmatprep.mubr.msk.f32.mxu0 %vm701_vm3, %v7672_v42  ;;  %5374 = vmatprep.subr.msk.mxu1 %vm714_vm2, %v1819_v50  ;;  %v1865_v50 = vld [vmem:[%s8874_s5 + $0x610] sm:$0x1] }
 0x381   :  { %6705 = vmatprep.subr.bf16.mxu0 %v6704_v46  ;;  %3643 = vmatprep.mubr.f32.mxu1 %v7065_v49  ;;  %v1867_v46 = vld [vmem:[%s8874_s5 + $0x620] sm:$0xff] }
 0x382   :  { %6330 = vmatmul.mubr.msk.f32.gmra.mrb[116].mxu0 %vm701_vm3, %v7667_v40 }
 0x383   :  { %5375 = vmatpush1.msk.msra.mxu1 %vm714_vm2, %v1818_v52  ;;  %6707 = vmatpush1.bf16.msra.mxu0 %v6706_v51  ;;  %v6748_v51 = vpack.c.bf16 %v1870_v47, %v1867_v46  ;;  %v1866_v52 = vld [vmem:[%s8874_s5 + $0x618] sm:$0xff]  ;;  %v4858_v46 = vlaneseq }
 0x384   :  { %5376 = vmatmul.mubr.msk.f32.vlgmr.msra.gmra.mrb[82].mxu1 %vm701_vm3, %v7654_v32  ;;  %6709 = vmatprep.subr.bf16.mxu1 %v6708_v53 }
 0x385   :  { %6711 = vmatpush3.bf16.msra.mxu1 %v6708_v53  ;;  %5385 = vmatprep.subr.msk.mxu0 %vm714_vm2, %v1834_v56  ;;  %v1869_v53 = vld [vmem:[%s8874_s5 + $0x630] sm:$0xff]  ;;  %v1876_v56 = vld [vmem:[%s8874_s5 + $0x668] sm:$0xff] }
 0x386   :  { %3649 = vmatprep.mubr.f32.mxu1 %v7065_v49  ;;  %3826 = vmatprep.mubr.f32.mxu0 %v7065_v49  ;;  %v6750_v59 = vpack.c.bf16 %v1869_v53, %v1866_v52  ;;  %v4851_v52 = vld [vmem:[%s8873_s4] sm:$0xf]  ;;  %s7067_s4 = smov [#allocation2]  }
 0x387   :  { %5386 = vmatpush1.msk.msra.mxu0 %vm714_vm2, %v1833_v60  ;;  %6713 = vmatprep.subr.bf16.mxu1 %v6712_v57  ;;  %v1872_v60 = vld [vmem:[%s8874_s5 + $0x648] sm:$0xff]  ;;  %v8676_v53 = vunpack.c.l.bf16 %v4851_v52 }
 0x388   :  { %5377 = vmatmul.mubr.msk.f32.gmra.mrb[84].mxu1 %vm701_vm3, %v7651_v29  ;;  %5387 = vmatmul.mubr.msk.f32.vlgmr.msra.gmra.mrb[118].mxu0 %vm701_vm3, %v7654_v32 }
 0x389   :  { %3655 = vmatprep.mubr.f32.mxu1 %v7065_v49  ;;  %3832 = vmatprep.mubr.f32.mxu0 %v7065_v49 }
 0x38a   :  { %6715 = vmatpush3.bf16.msra.mxu1 %v6712_v57  ;;  %6725 = vmatprep.subr.bf16.mxu0 %v6724_v61  ;;  %v1882_v57 = vld [vmem:[%s8874_s5 + $0x698] sm:$0xff] }
 0x38b   :  { %6727 = vmatpush3.bf16.msra.mxu0 %v6724_v61  ;;  %6340 = vmatprep.subr.msk.mxu1 %vm714_vm2, %v1835_v0  ;;  %v6752_v61 = vpack.c.bf16 %v1876_v56, %v1873_v55  ;;  %v6764_v1 = vpack.c.bf16 %v1885_v58, %v1882_v57 }
 0x38c   :  { %5378 = vmatmul.mubr.msk.f32.gmra.mrb[86].mxu1 %vm701_vm3, %v7672_v42  ;;  %5388 = vmatmul.mubr.msk.f32.gmra.mrb[120].mxu0 %vm701_vm3, %v7651_v29 }
 0x38d   :  { %3661 = vmatprep.mubr.f32.mxu1 %v7065_v49  ;;  %3838 = vmatprep.mubr.f32.mxu0 %v7065_v49 }
 0x38e   :  { %6341 = vmatpush3.msk.msra.mxu1 %vm714_vm2, %v1835_v0  ;;  %6729 = vmatprep.subr.bf16.mxu0 %v6728_v3  ;;  %v1884_v0 = vld [vmem:[%s8874_s5 + $0x6a8] sm:$0xff] }
 0x38f   :  { %6731 = vmatpush3.bf16.msra.mxu0 %v6728_v3  ;;  %6717 = vmatprep.subr.bf16.mxu1 %v6716_v4  ;;  %v1891_v3 = vld [vmem:[%s8874_s5 + $0x6e0] sm:$0xff]  ;;  %v6754_v4 = vpack.c.bf16 %v1875_v62, %v1872_v60  ;;  %v6766_v5 = vpack.c.bf16 %v1884_v0, %v1881_v63 }
 0x390   :  { %5379 = vmatmul.mubr.msk.f32.gmra.mrb[88].mxu1 %vm701_vm3, %v7667_v40  ;;  %5389 = vmatmul.mubr.msk.f32.gmra.mrb[122].mxu0 %vm701_vm3, %v7672_v42  ;;  %v6768_v9 = vpack.c.bf16 %v1891_v3, %v1888_v2 }
 0x391   :  { %6342 = vmatprep.mubr.msk.f32.mxu1 %vm701_vm3, %v7654_v32  ;;  %3844 = vmatprep.mubr.f32.mxu0 %v7065_v49 }
 0x392   :  { %6356 = vmatprep.subr.msk.mxu0 %vm714_vm2, %v1850_v7 }
 0x393   :  { %6357 = vmatpush3.msk.msra.mxu0 %vm714_vm2, %v1850_v7  ;;  %v1890_v7 = vld [vmem:[%s8874_s5 + $0x6d8] sm:$0xff] }
 0x394   :  { %5390 = vmatmul.mubr.msk.f32.gmra.mrb[124].mxu0 %vm701_vm3, %v7667_v40  ;;  %6343 = vmatmul.mubr.msk.f32.vlgmr.msra.gmra.mrb[90].mxu1 %vm701_vm3, %v7651_v29 }
 0x395   :  { %6719 = vmatpush1.bf16.msra.mxu1 %v6718_v12  ;;  %6345 = vmatprep.mubr.msk.f32.mxu1 %vm701_vm3, %v7672_v42  ;;  %v6770_v12 = vpack.c.bf16 %v1890_v7, %v1887_v6 }
 0x396   :  { %6358 = vmatprep.mubr.msk.f32.mxu0 %vm701_vm3, %v7654_v32  ;;  %6721 = vmatprep.subr.bf16.mxu1 %v6720_v14  ;;  %v6772_v14 = vpack.c.bf16 %v1886_v11, %v1883_v10 }
 0x397   :  { %6733 = vmatprep.subr.bf16.mxu0 %v6732_v25  ;;  %v6776_v25 = vpack.c.bf16 %v1892_v16, %v1889_v15 }
 0x398   :  { %6346 = vmatmul.mubr.msk.f32.gmra.mrb[92].mxu1 %vm701_vm3, %v7667_v40  ;;  %6359 = vmatmul.mubr.msk.f32.vlgmr.msra.gmra.mrb[126].mxu0 %vm701_vm3, %v7651_v29 }
 0x399   :  { %6723 = vmatpush1.bf16.msra.mxu1 %v6722_v19  ;;  %6735 = vmatpush1.bf16.msra.mxu0 %v6734_v20  ;;  %v1893_v19 = vld [vmem:[%s8874_s5 + $0x6f0] sm:$0x1]  ;;  %v6788_v20 = vpack.c.bf16 %v1901_v18, %v1898_v17 }
 0x39a   :  { %6361 = vmatprep.mubr.msk.f32.mxu0 %vm701_vm3, %v7672_v42  ;;  %5396 = vmatprep.subr.msk.mxu1 %vm714_vm2, %v1849_v24  ;;  %v1895_v24 = vld [vmem:[%s8874_s5 + $0x700] sm:$0x1] }
 0x39b   :  { %6737 = vmatprep.subr.bf16.mxu0 %v6736_v26  ;;  %4009 = vmatprep.mubr.f32.mxu1 %v7065_v49  ;;  %v1897_v26 = vld [vmem:[%s8874_s5 + $0x710] sm:$0xff] }
 0x39c   :  { %6362 = vmatmul.mubr.msk.f32.gmra.mrb[128].mxu0 %vm701_vm3, %v7667_v40 }
 0x39d   :  { %5397 = vmatpush1.msk.msra.mxu1 %vm714_vm2, %v1848_v31  ;;  %6739 = vmatpush1.bf16.msra.mxu0 %v6738_v30  ;;  %v6780_v30 = vpack.c.bf16 %v1900_v27, %v1897_v26  ;;  %v1896_v31 = vld [vmem:[%s8874_s5 + $0x708] sm:$0xff] }
 0x39e   :  { %5398 = vmatmul.mubr.msk.f32.vlgmr.msra.gmra.mrb[94].mxu1 %vm701_vm3, %v7654_v32  ;;  %6741 = vmatprep.subr.bf16.mxu1 %v6740_v33 }
 0x39f   :  { %6743 = vmatpush3.bf16.msra.mxu1 %v6740_v33  ;;  %5407 = vmatprep.subr.msk.mxu0 %vm714_vm2, %v1864_v36  ;;  %v1899_v33 = vld [vmem:[%s8874_s5 + $0x720] sm:$0xff]  ;;  %v1906_v36 = vld [vmem:[%s8874_s5 + $0x758] sm:$0xff] }
 0x3a0   :  { %4015 = vmatprep.mubr.f32.mxu1 %v7065_v49  ;;  %4192 = vmatprep.mubr.f32.mxu0 %v7065_v49  ;;  %v6784_v38 = vpack.c.bf16 %v1906_v36, %v1903_v35 }
 0x3a1   :  { %5408 = vmatpush1.msk.msra.mxu0 %vm714_vm2, %v1863_v41  ;;  %6745 = vmatprep.subr.bf16.mxu1 %v6744_v37  ;;  %v1905_v41 = vld [vmem:[%s8874_s5 + $0x750] sm:$0xff] }
 0x3a2   :  { %5399 = vmatmul.mubr.msk.f32.gmra.mrb[96].mxu1 %vm701_vm3, %v7651_v29  ;;  %5409 = vmatmul.mubr.msk.f32.vlgmr.msra.gmra.mrb[130].mxu0 %vm701_vm3, %v7654_v32 }
 0x3a3   :  { %4021 = vmatprep.mubr.f32.mxu1 %v7065_v49  ;;  %4198 = vmatprep.mubr.f32.mxu0 %v7065_v49 }
 0x3a4   :  { %6747 = vmatpush3.bf16.msra.mxu1 %v6744_v37  ;;  %6757 = vmatprep.subr.bf16.mxu0 %v6756_v43  ;;  %v6782_v37 = vpack.c.bf16 %v1899_v33, %v1896_v31 }
 0x3a5   :  { %6759 = vmatpush3.bf16.msra.mxu0 %v6756_v43  ;;  %6372 = vmatprep.subr.msk.mxu1 %vm714_vm2, %v1865_v50  ;;  %v6786_v43 = vpack.c.bf16 %v1905_v41, %v1902_v39 }
 0x3a6   :  { %5400 = vmatmul.mubr.msk.f32.gmra.mrb[98].mxu1 %vm701_vm3, %v7672_v42  ;;  %5410 = vmatmul.mubr.msk.f32.gmra.mrb[132].mxu0 %vm701_vm3, %v7651_v29 }
 0x3a7   :  { %4027 = vmatprep.mubr.f32.mxu1 %v7065_v49  ;;  %4204 = vmatprep.mubr.f32.mxu0 %v7065_v49 }
 0x3a8   :  { %6373 = vmatpush3.msk.msra.mxu1 %vm714_vm2, %v1865_v50  ;;  %6761 = vmatprep.subr.bf16.mxu0 %v6760_v48  ;;  %v4856_v50 = vunpack.c.l.s4 %v7066_v45 }
 0x3a9   :  { %6763 = vmatpush3.bf16.msra.mxu0 %v6760_v48  ;;  %6749 = vmatprep.subr.bf16.mxu1 %v6748_v51  ;;  %v4859_v48 = vshrl.u32 %v4858_v46, 7  ;;  %v1908_v51 = vld [vmem:[%s8874_s5 + $0x768] sm:$0x1]  ;;  %s5189_s5 = sshll.u32 %s7067_s4, 4  ;;  %s5190_s5 = int_to_ptr.vmem [resolvable:$true] %s5189_s5 }
 0x3aa   :  { %5401 = vmatmul.mubr.msk.f32.gmra.mrb[100].mxu1 %vm701_vm3, %v7667_v40  ;;  %5411 = vmatmul.mubr.msk.f32.gmra.mrb[134].mxu0 %vm701_vm3, %v7672_v42  ;;  %v4857_v47 = vunpack.c.0.s8 %v4856_v50  ;;  %s7041_s12 = scalar_lea.vmem %s5190_s5, 96  ;;  %p7046_p1 = scmp.lt.s32.totalorder %s5190_s5, %s5190_s5 }
 0x3ab   :  { %6374 = vmatprep.mubr.msk.f32.mxu1 %vm701_vm3, %v7654_v32  ;;  %4210 = vmatprep.mubr.f32.mxu0 %v7065_v49  ;;  %p7042_p0 = scmp.ne.s32.totalorder %s5190_s5, %s7041_s12  ;;  %p7047_p2 = scmp.lt.s32.totalorder %s7041_s12, %s7041_s12 }
 0x3ac   :  { %6388 = vmatprep.subr.msk.mxu0 %vm714_vm2, %v1880_v54 }
 0x3ad   :  { %6389 = vmatpush3.msk.msra.mxu0 %vm714_vm2, %v1880_v54  ;;  %v8678_v54 = vsub.s32 %v4857_v47, %v4859_v48  ;;  %p7048_p3 = por %p7047_p2, %p7046_p1 }
 0x3ae   :  { %5412 = vmatmul.mubr.msk.f32.gmra.mrb[136].mxu0 %vm701_vm3, %v7667_v40  ;;  %6375 = vmatmul.mubr.msk.f32.vlgmr.msra.gmra.mrb[102].mxu1 %vm701_vm3, %v7651_v29 }
 0x3af   :  { %6751 = vmatpush1.bf16.msra.mxu1 %v6750_v59  ;;  %6377 = vmatprep.mubr.msk.f32.mxu1 %vm701_vm3, %v7672_v42  ;;  %v8685_v55 = vrot.slane %v8676_v53, %v8678_v54  ;;  %p7049_p4 = pnand %p7048_p3, %p7042_p0 }
 0x3b0   :  { %6390 = vmatprep.mubr.msk.f32.mxu0 %vm701_vm3, %v7654_v32  ;;  %6753 = vmatprep.subr.bf16.mxu1 %v6752_v61 }
 0x3b1   :  { %6765 = vmatprep.subr.bf16.mxu0 %v6764_v1  ;;  %v4869_v56 = vcombine.high %v8685_v55, %v8685_v55 }
 0x3b2   :  { %6378 = vmatmul.mubr.msk.f32.gmra.mrb[104].mxu1 %vm701_vm3, %v7667_v40  ;;  %6391 = vmatmul.mubr.msk.f32.vlgmr.msra.gmra.mrb[138].mxu0 %vm701_vm3, %v7651_v29 }
 0x3b3   :  { %6755 = vmatpush1.bf16.msra.mxu1 %v6754_v4  ;;  %6767 = vmatpush1.bf16.msra.mxu0 %v6766_v5 }
 0x3b4   :  { %6393 = vmatprep.mubr.msk.f32.mxu0 %vm701_vm3, %v7672_v42  ;;  %5418 = vmatprep.subr.msk.mxu1 %vm714_vm2, %v1879_v8 }
 0x3b5   :  { %6769 = vmatprep.subr.bf16.mxu0 %v6768_v9  ;;  %4375 = vmatprep.mubr.f32.mxu1 %v7065_v49 }
 0x3b6   :  { %6394 = vmatmul.mubr.msk.f32.gmra.mrb[140].mxu0 %vm701_vm3, %v7667_v40 }
 0x3b7   :  { %5419 = vmatpush1.msk.msra.mxu1 %vm714_vm2, %v1878_v13  ;;  %6771 = vmatpush1.bf16.msra.mxu0 %v6770_v12 }
 0x3b8   :  { %5420 = vmatmul.mubr.msk.f32.vlgmr.msra.gmra.mrb[106].mxu1 %vm701_vm3, %v7654_v32  ;;  %6773 = vmatprep.subr.bf16.mxu1 %v6772_v14 }
 0x3b9   :  { %6775 = vmatpush3.bf16.msra.mxu1 %v6772_v14  ;;  %5429 = vmatprep.subr.msk.mxu0 %vm714_vm2, %v1894_v23 }
 0x3ba   :  { %4381 = vmatprep.mubr.f32.mxu1 %v7065_v49  ;;  %4558 = vmatprep.mubr.f32.mxu0 %v7065_v49 }
 0x3bb   :  { %5430 = vmatpush1.msk.msra.mxu0 %vm714_vm2, %v1893_v19  ;;  %6777 = vmatprep.subr.bf16.mxu1 %v6776_v25 }
 0x3bc   :  { %5421 = vmatmul.mubr.msk.f32.gmra.mrb[108].mxu1 %vm701_vm3, %v7651_v29  ;;  %5431 = vmatmul.mubr.msk.f32.vlgmr.msra.gmra.mrb[142].mxu0 %vm701_vm3, %v7654_v32 }
 0x3bd   :  { %4387 = vmatprep.mubr.f32.mxu1 %v7065_v49  ;;  %4564 = vmatprep.mubr.f32.mxu0 %v7065_v49 }
 0x3be   :  { %6779 = vmatpush3.bf16.msra.mxu1 %v6776_v25  ;;  %6789 = vmatprep.subr.bf16.mxu0 %v6788_v20 }
 0x3bf   :  { %6404 = vmatprep.subr.msk.mxu1 %vm714_vm2, %v1895_v24  ;;  %6791 = vmatpush3.bf16.msra.mxu0 %v6788_v20 }
 0x3c0   :  { %5422 = vmatmul.mubr.msk.f32.gmra.mrb[110].mxu1 %vm701_vm3, %v7672_v42  ;;  %5432 = vmatmul.mubr.msk.f32.gmra.mrb[144].mxu0 %vm701_vm3, %v7651_v29 }
 0x3c1   :  { %4393 = vmatprep.mubr.f32.mxu1 %v7065_v49  ;;  %4570 = vmatprep.mubr.f32.mxu0 %v7065_v49 }
 0x3c2   :  { %6405 = vmatpush3.msk.msra.mxu1 %vm714_vm2, %v1895_v24  ;;  %6793 = vmatprep.subr.bf16.mxu0 %v6792_v28 }
 0x3c3   :  { %6781 = vmatprep.subr.bf16.mxu1 %v6780_v30  ;;  %6795 = vmatpush3.bf16.msra.mxu0 %v6792_v28 }
 0x3c4   :  { %5423 = vmatmul.mubr.msk.f32.gmra.mrb[112].mxu1 %vm701_vm3, %v7667_v40  ;;  %5433 = vmatmul.mubr.msk.f32.gmra.mrb[146].mxu0 %vm701_vm3, %v7672_v42 }
 0x3c5   :  { %6406 = vmatprep.mubr.msk.f32.mxu1 %vm701_vm3, %v7654_v32  ;;  %4576 = vmatprep.mubr.f32.mxu0 %v7065_v49 }
 0x3c6   :  { %6420 = vmatprep.subr.msk.mxu0 %vm714_vm2, %v1910_v34 }
 0x3c7   :  { %6421 = vmatpush3.msk.msra.mxu0 %vm714_vm2, %v1910_v34 }
 0x3c8   :  { %5434 = vmatmul.mubr.msk.f32.gmra.mrb[148].mxu0 %vm701_vm3, %v7667_v40  ;;  %6407 = vmatmul.mubr.msk.f32.vlgmr.msra.gmra.mrb[114].mxu1 %vm701_vm3, %v7651_v29 }
 0x3c9   :  { %6783 = vmatpush1.bf16.msra.mxu1 %v6782_v37  ;;  %6409 = vmatprep.mubr.msk.f32.mxu1 %vm701_vm3, %v7672_v42 }
 0x3ca   :  { %6422 = vmatprep.mubr.msk.f32.mxu0 %vm701_vm3, %v7654_v32  ;;  %6785 = vmatprep.subr.bf16.mxu1 %v6784_v38 }
 0x3cc   :  { %6410 = vmatmul.mubr.msk.f32.gmra.mrb[116].mxu1 %vm701_vm3, %v7667_v40  ;;  %6423 = vmatmul.mubr.msk.f32.vlgmr.msra.gmra.mrb[150].mxu0 %vm701_vm3, %v7651_v29 }
 0x3cd   :  { %6787 = vmatpush1.bf16.msra.mxu1 %v6786_v43  ;;  %6425 = vmatprep.mubr.msk.f32.mxu0 %vm701_vm3, %v7672_v42 }
 0x3ce   :  { %5440 = vmatprep.subr.msk.mxu1 %vm714_vm2, %v1909_v44  ;;  %4741 = vmatprep.mubr.f32.mxu1 %v7065_v49 }
 0x3d0   :  { %6426 = vmatmul.mubr.msk.f32.gmra.mrb[152].mxu0 %vm701_vm3, %v7667_v40 }
 0x3d1   :  { %5441 = vmatpush1.msk.msra.mxu1 %vm714_vm2, %v1908_v51  ;;  %5081 = vmatprep.mubr.f32.mxu0 %v4869_v56 }
 0x3d2   :  { %5442 = vmatmul.mubr.msk.f32.vlgmr.msra.gmra.mrb[118].mxu1 %vm701_vm3, %v7654_v32 }
 0x3d3   :  { %4747 = vmatprep.mubr.f32.mxu1 %v7065_v49 }
 0x3d6   :  { %5443 = vmatmul.mubr.msk.f32.gmra.mrb[120].mxu1 %vm701_vm3, %v7651_v29 }
 0x3d7   :  { %4753 = vmatprep.mubr.f32.mxu1 %v7065_v49 }
 0x3da   :  { %5444 = vmatmul.mubr.msk.f32.gmra.mrb[122].mxu1 %vm701_vm3, %v7672_v42 }
 0x3db   :  { %4759 = vmatprep.mubr.f32.mxu1 %v7065_v49 }
 0x3de   :  { %5445 = vmatmul.mubr.msk.f32.gmra.mrb[124].mxu1 %vm701_vm3, %v7667_v40  ;;  %v1998_v32 = vpop.f32.mrb[26].mxu1 }
 0x3df   :  { %v2000_v57 = vpop.f32.mrb[27].mxu1  ;;  %v8700_v58 = vpop.f32.mrb[62].mxu0  ;;  %4939 = vmatprep.mubr.f32.mxu1 %v4869_v56 }
 0x3e0   :  { %v8702_v59 = vpop.f32.mrb[63].mxu0 }
 0x3e1   :  { %v6926_v29 = vpack.c.bf16 %v8700_v58, %v8702_v59 }
 0x3e2   :  { %v2004_v60 = vpop.f32.mrb[28].mxu1 }
 0x3e3   :  { %v6798_v61 = vpack.c.bf16 %v2004_v60, %v1998_v32  ;;  %v2006_v62 = vpop.f32.mrb[29].mxu1  ;;  %v8706_v63 = vpop.f32.mrb[64].mxu0 }
 0x3e4   :  { %v6796_v42 = vpack.c.bf16 %v2006_v62, %v2000_v57  ;;  %v8708_v49 = vpop.f32.mrb[65].mxu0 }
 0x3e5   :  { %v6930_v40 = vpack.c.bf16 %v8706_v63, %v8708_v49 }
 0x3e6   :  { %v2010_v0 = vpop.f32.mrb[30].mxu1  ;;  %6797 = vmatprep.subr.bf16.mxu1 %v6796_v42 }
 0x3e7   :  { %v2012_v1 = vpop.f32.mrb[31].mxu1  ;;  %6799 = vmatpush1.bf16.msra.mxu1 %v6798_v61 }
 0x3e9   :  { %v8712_v2 = vpop.f32.mrb[66].mxu0 }
 0x3ea   :  { %v8714_v3 = vpop.f32.mrb[67].mxu0 }
 0x3eb   :  { %v6934_v4 = vpack.c.bf16 %v8712_v2, %v8714_v3  ;;  %v2016_v5 = vpop.f32.mrb[32].mxu1 }
 0x3ec   :  { %v6802_v6 = vpack.c.bf16 %v2016_v5, %v2010_v0  ;;  %v2018_v7 = vpop.f32.mrb[33].mxu1 }
 0x3ed   :  { %v6800_v8 = vpack.c.bf16 %v2018_v7, %v2012_v1  ;;  %v8718_v9 = vpop.f32.mrb[68].mxu0 }
 0x3ee   :  { %v8720_v10 = vpop.f32.mrb[69].mxu0 }
 0x3ef   :  { %v6938_v11 = vpack.c.bf16 %v8718_v9, %v8720_v10  ;;  %v2181_v12 = vpop.f32.mrb[34].mxu1  ;;  %6801 = vmatprep.subr.bf16.mxu1 %v6800_v8 }
 0x3f0   :  { %v2183_v13 = vpop.f32.mrb[35].mxu1  ;;  %6803 = vmatpush1.bf16.msra.mxu1 %v6802_v6 }
 0x3f3   :  { %v2187_v14 = vpop.f32.mrb[36].mxu1  ;;  %v2364_v15 = vpop.f32.mrb[70].mxu0 }
 0x3f4   :  { %v6806_v16 = vpack.c.bf16 %v2187_v14, %v2181_v12  ;;  %v2189_v23 = vpop.f32.mrb[37].mxu1  ;;  %v2366_v25 = vpop.f32.mrb[71].mxu0 }
 0x3f5   :  { %v6804_v17 = vpack.c.bf16 %v2189_v23, %v2183_v13 }
 0x3f7   :  { %v2193_v18 = vpop.f32.mrb[38].mxu1  ;;  %v2370_v19 = vpop.f32.mrb[72].mxu0  ;;  %6805 = vmatprep.subr.bf16.mxu1 %v6804_v17 }
 0x3f8   :  { %v6814_v20 = vpack.c.bf16 %v2370_v19, %v2364_v15  ;;  %v2195_v21 = vpop.f32.mrb[39].mxu1  ;;  %v2372_v22 = vpop.f32.mrb[73].mxu0  ;;  %6807 = vmatpush1.bf16.msra.mxu1 %v6806_v16 }
 0x3f9   :  { %v6812_v24 = vpack.c.bf16 %v2372_v22, %v2366_v25 }
 0x3fb   :  { %v2199_v26 = vpop.f32.mrb[40].mxu1  ;;  %v2376_v27 = vpop.f32.mrb[74].mxu0 }
 0x3fc   :  { %v6810_v28 = vpack.c.bf16 %v2199_v26, %v2193_v18  ;;  %v2201_v30 = vpop.f32.mrb[41].mxu1  ;;  %v2378_v31 = vpop.f32.mrb[75].mxu0 }
 0x3fd   :  { %v6808_v33 = vpack.c.bf16 %v2201_v30, %v2195_v21 }
 0x3ff   :  { %v2382_v34 = vpop.f32.mrb[76].mxu0  ;;  %v8724_v35 = vpop.f32.mrb[42].mxu1  ;;  %6809 = vmatprep.subr.bf16.mxu1 %v6808_v33 }
 0x400   :  { %v6818_v36 = vpack.c.bf16 %v2382_v34, %v2376_v27  ;;  %v2384_v37 = vpop.f32.mrb[77].mxu0  ;;  %v8726_v38 = vpop.f32.mrb[43].mxu1  ;;  %6811 = vmatpush1.bf16.msra.mxu1 %v6810_v28 }
 0x401   :  { %v6816_v39 = vpack.c.bf16 %v2384_v37, %v2378_v31  ;;  %v6942_v41 = vpack.c.bf16 %v8724_v35, %v8726_v38  ;;  %6813 = vmatprep.subr.bf16.mxu1 %v6812_v24 }
 0x403   :  { %v8730_v43 = vpop.f32.mrb[44].mxu1  ;;  %v8732_v44 = vpop.f32.mrb[78].mxu0 }
 0x404   :  { %v8734_v45 = vpop.f32.mrb[45].mxu1  ;;  %v8736_v50 = vpop.f32.mrb[79].mxu0  ;;  %6815 = vmatpush1.bf16.msra.mxu1 %v6814_v20 }
 0x405   :  { %v6946_v46 = vpack.c.bf16 %v8730_v43, %v8734_v45  ;;  %v6950_v47 = vpack.c.bf16 %v8732_v44, %v8736_v50  ;;  %6817 = vmatprep.subr.bf16.mxu1 %v6816_v39 }
 0x407   :  { %v8742_v48 = vpop.f32.mrb[80].mxu0 }
 0x408   :  { %v8744_v51 = vpop.f32.mrb[81].mxu0  ;;  %6819 = vmatpush1.bf16.msra.mxu1 %v6818_v36 }
 0x409   :  { %v2547_v52 = vpop.f32.mrb[46].mxu1  ;;  %v6954_v56 = vpack.c.bf16 %v8742_v48, %v8744_v51 }
 0x40a   :  { %v2549_v32 = vpop.f32.mrb[47].mxu1 }
 0x40d   :  { %v2553_v57 = vpop.f32.mrb[48].mxu1  ;;  %v2730_v60 = vpop.f32.mrb[82].mxu0 }
 0x40e   :  { %v6822_v61 = vpack.c.bf16 %v2553_v57, %v2547_v52  ;;  %v2555_v62 = vpop.f32.mrb[49].mxu1  ;;  %v2732_v42 = vpop.f32.mrb[83].mxu0 }
 0x40f   :  { %v6820_v0 = vpack.c.bf16 %v2555_v62, %v2549_v32 }
 0x411   :  { %v2559_v1 = vpop.f32.mrb[50].mxu1  ;;  %v2736_v5 = vpop.f32.mrb[84].mxu0  ;;  %6821 = vmatprep.subr.bf16.mxu1 %v6820_v0 }
 0x412   :  { %v6830_v6 = vpack.c.bf16 %v2736_v5, %v2730_v60  ;;  %v2561_v7 = vpop.f32.mrb[51].mxu1  ;;  %v2738_v8 = vpop.f32.mrb[85].mxu0  ;;  %6823 = vmatpush1.bf16.msra.mxu1 %v6822_v61 }
 0x413   :  { %v6828_v12 = vpack.c.bf16 %v2738_v8, %v2732_v42 }
 0x415   :  { %v2565_v13 = vpop.f32.mrb[52].mxu1  ;;  %v2742_v14 = vpop.f32.mrb[86].mxu0 }
 0x416   :  { %v6826_v15 = vpack.c.bf16 %v2565_v13, %v2559_v1  ;;  %v2567_v16 = vpop.f32.mrb[53].mxu1  ;;  %v2744_v23 = vpop.f32.mrb[87].mxu0 }
 0x417   :  { %v6824_v25 = vpack.c.bf16 %v2567_v16, %v2561_v7 }
 0x419   :  { %v2748_v17 = vpop.f32.mrb[88].mxu0  ;;  %v6248_v18 = vpop.f32.mrb[54].mxu1  ;;  %6825 = vmatprep.subr.bf16.mxu1 %v6824_v25 }
 0x41a   :  { %v6834_v19 = vpack.c.bf16 %v2748_v17, %v2742_v14  ;;  %v2750_v20 = vpop.f32.mrb[89].mxu0  ;;  %v2819_v21 = vpop.f32.mrb[55].mxu1  ;;  %6827 = vmatpush1.bf16.msra.mxu1 %v6826_v15 }
 0x41b   :  { %v6832_v22 = vpack.c.bf16 %v2750_v20, %v2744_v23  ;;  %v6924_v24 = vpack.c.bf16 %v6248_v18, %v2819_v21  ;;  %6829 = vmatprep.subr.bf16.mxu1 %v6828_v12 }
 0x41d   :  { %v6251_v26 = vpop.f32.mrb[56].mxu1  ;;  %v6264_v27 = vpop.f32.mrb[90].mxu0  ;;  %6925 = vmatprep.subr.bf16.mxu0 %v6924_v24 }
 0x41e   :  { %v2829_v28 = vpop.f32.mrb[57].mxu1  ;;  %v3002_v30 = vpop.f32.mrb[91].mxu0  ;;  %6831 = vmatpush1.bf16.msra.mxu1 %v6830_v6  ;;  %6927 = vmatpush3.bf16.msra.mxu0 %v6926_v29 }
 0x41f   :  { %v6928_v31 = vpack.c.bf16 %v6251_v26, %v2829_v28  ;;  %v6932_v33 = vpack.c.bf16 %v6264_v27, %v3002_v30  ;;  %6833 = vmatprep.subr.bf16.mxu1 %v6832_v22 }
 0x421   :  { %v6267_v34 = vpop.f32.mrb[92].mxu0  ;;  %6929 = vmatprep.subr.bf16.mxu0 %v6928_v31 }
 0x422   :  { %v3012_v36 = vpop.f32.mrb[93].mxu0  ;;  %6835 = vmatpush1.bf16.msra.mxu1 %v6834_v19  ;;  %6931 = vmatpush3.bf16.msra.mxu0 %v6930_v40  ;;  %v4854_v19 = vcombine.high %v8676_v53, %v8676_v53 }
 0x423   :  { %v2913_v37 = vpop.f32.mrb[58].mxu1  ;;  %v6936_v39 = vpack.c.bf16 %v6267_v34, %v3012_v36  ;;  %6933 = vmatprep.subr.bf16.mxu0 %v6932_v33 }
 0x424   :  { %v2915_v52 = vpop.f32.mrb[59].mxu1  ;;  %v8772_v35 = vrot.slane %v4854_v19, %v8678_v54 }
 0x426   :  { %6935 = vmatpush3.bf16.msra.mxu0 %v6934_v4  ;;  %v4870_v53 = vcombine.high %v8772_v35, %v8772_v35 }
 0x427   :  { %v2919_v58 = vpop.f32.mrb[60].mxu1  ;;  %v3096_v59 = vpop.f32.mrb[94].mxu0  ;;  %6937 = vmatprep.subr.bf16.mxu0 %v6936_v39 }
 0x428   :  { %v6838_v29 = vpack.c.bf16 %v2919_v58, %v2913_v37  ;;  %v2921_v32 = vpop.f32.mrb[61].mxu1  ;;  %v3098_v57 = vpop.f32.mrb[95].mxu0 }
 0x429   :  { %v6836_v60 = vpack.c.bf16 %v2921_v32, %v2915_v52 }
 0x42a   :  { %6939 = vmatpush3.bf16.msra.mxu0 %v6938_v11 }
 0x42b   :  { %v2925_v63 = vpop.f32.mrb[62].mxu1  ;;  %v3102_v49 = vpop.f32.mrb[96].mxu0  ;;  %6837 = vmatprep.subr.bf16.mxu1 %v6836_v60 }
 0x42c   :  { %v6846_v40 = vpack.c.bf16 %v3102_v49, %v3096_v59  ;;  %v2927_v61 = vpop.f32.mrb[63].mxu1  ;;  %v3104_v62 = vpop.f32.mrb[97].mxu0  ;;  %6839 = vmatpush1.bf16.msra.mxu1 %v6838_v29 }
 0x42d   :  { %v6844_v2 = vpack.c.bf16 %v3104_v62, %v3098_v57 }
 0x42f   :  { %v2931_v3 = vpop.f32.mrb[64].mxu1  ;;  %v3108_v4 = vpop.f32.mrb[98].mxu0 }
 0x430   :  { %v6842_v42 = vpack.c.bf16 %v2931_v3, %v2925_v63  ;;  %v2933_v0 = vpop.f32.mrb[65].mxu1  ;;  %v3110_v1 = vpop.f32.mrb[99].mxu0 }
 0x431   :  { %v6840_v5 = vpack.c.bf16 %v2933_v0, %v2927_v61 }
 0x433   :  { %v3114_v6 = vpop.f32.mrb[100].mxu0  ;;  %v6280_v7 = vpop.f32.mrb[66].mxu1  ;;  %6841 = vmatprep.subr.bf16.mxu1 %v6840_v5 }
 0x434   :  { %v6850_v8 = vpack.c.bf16 %v3114_v6, %v3108_v4  ;;  %v3116_v9 = vpop.f32.mrb[101].mxu0  ;;  %v3185_v10 = vpop.f32.mrb[67].mxu1  ;;  %6843 = vmatpush1.bf16.msra.mxu1 %v6842_v42 }
 0x435   :  { %v6848_v11 = vpack.c.bf16 %v3116_v9, %v3110_v1  ;;  %v6940_v12 = vpack.c.bf16 %v6280_v7, %v3185_v10  ;;  %6845 = vmatprep.subr.bf16.mxu1 %v6844_v2 }
 0x437   :  { %v6283_v13 = vpop.f32.mrb[68].mxu1  ;;  %v6296_v14 = vpop.f32.mrb[102].mxu0  ;;  %6941 = vmatprep.subr.bf16.mxu0 %v6940_v12 }
 0x438   :  { %v3195_v15 = vpop.f32.mrb[69].mxu1  ;;  %v3368_v16 = vpop.f32.mrb[103].mxu0  ;;  %6847 = vmatpush1.bf16.msra.mxu1 %v6846_v40  ;;  %6943 = vmatpush3.bf16.msra.mxu0 %v6942_v41 }
 0x439   :  { %v6944_v23 = vpack.c.bf16 %v6283_v13, %v3195_v15  ;;  %v6948_v25 = vpack.c.bf16 %v6296_v14, %v3368_v16  ;;  %6849 = vmatprep.subr.bf16.mxu1 %v6848_v11 }
 0x43b   :  { %v6299_v17 = vpop.f32.mrb[104].mxu0  ;;  %6945 = vmatprep.subr.bf16.mxu0 %v6944_v23 }
 0x43c   :  { %v3378_v18 = vpop.f32.mrb[105].mxu0  ;;  %6851 = vmatpush1.bf16.msra.mxu1 %v6850_v8  ;;  %6947 = vmatpush3.bf16.msra.mxu0 %v6946_v46 }
 0x43d   :  { %v3279_v20 = vpop.f32.mrb[70].mxu1  ;;  %v6952_v21 = vpack.c.bf16 %v6299_v17, %v3378_v18  ;;  %6949 = vmatprep.subr.bf16.mxu0 %v6948_v25 }
 0x43e   :  { %v3281_v22 = vpop.f32.mrb[71].mxu1 }
 0x440   :  { %6951 = vmatpush3.bf16.msra.mxu0 %v6950_v47 }
 0x441   :  { %v3285_v38 = vpop.f32.mrb[72].mxu1  ;;  %v3462_v41 = vpop.f32.mrb[106].mxu0  ;;  %6953 = vmatprep.subr.bf16.mxu0 %v6952_v21 }
 0x442   :  { %v6854_v24 = vpack.c.bf16 %v3285_v38, %v3279_v20  ;;  %v3287_v43 = vpop.f32.mrb[73].mxu1  ;;  %v3464_v45 = vpop.f32.mrb[107].mxu0 }
 0x443   :  { %v6852_v46 = vpack.c.bf16 %v3287_v43, %v3281_v22 }
 0x444   :  { %6955 = vmatpush3.bf16.msra.mxu0 %v6954_v56 }
 0x445   :  { %v3291_v26 = vpop.f32.mrb[74].mxu1  ;;  %v3468_v44 = vpop.f32.mrb[108].mxu0  ;;  %6853 = vmatprep.subr.bf16.mxu1 %v6852_v46 }
 0x446   :  { %v6862_v50 = vpack.c.bf16 %v3468_v44, %v3462_v41  ;;  %v3293_v47 = vpop.f32.mrb[75].mxu1  ;;  %v3470_v27 = vpop.f32.mrb[109].mxu0  ;;  %6855 = vmatpush1.bf16.msra.mxu1 %v6854_v24 }
 0x447   :  { %v6860_v28 = vpack.c.bf16 %v3470_v27, %v3464_v45  ;;  %5082 = vmatmul.mubr.f32.vlgmr.msra.gmra.mrb[154].mxu0 %v8685_v55 }
 0x448   :  { %5151 = vmatprep.mubr.f32.mxu0 %v4870_v53 }
 0x449   :  { %v3297_v30 = vpop.f32.mrb[76].mxu1  ;;  %v3474_v31 = vpop.f32.mrb[110].mxu0 }
 0x44a   :  { %v6858_v33 = vpack.c.bf16 %v3297_v30, %v3291_v26  ;;  %v3299_v34 = vpop.f32.mrb[77].mxu1  ;;  %v3476_v48 = vpop.f32.mrb[111].mxu0 }
 0x44b   :  { %v6856_v51 = vpack.c.bf16 %v3299_v34, %v3293_v47 }
 0x44d   :  { %v3480_v56 = vpop.f32.mrb[112].mxu0  ;;  %v8780_v36 = vpop.f32.mrb[78].mxu1  ;;  %6857 = vmatprep.subr.bf16.mxu1 %v6856_v51 }
 0x44e   :  { %v6866_v37 = vpack.c.bf16 %v3480_v56, %v3474_v31  ;;  %v3482_v39 = vpop.f32.mrb[113].mxu0  ;;  %v8782_v52 = vpop.f32.mrb[79].mxu1  ;;  %6859 = vmatpush1.bf16.msra.mxu1 %v6858_v33 }
 0x44f   :  { %v6864_v58 = vpack.c.bf16 %v3482_v39, %v3476_v48  ;;  %v6958_v59 = vpack.c.bf16 %v8780_v36, %v8782_v52  ;;  %6861 = vmatprep.subr.bf16.mxu1 %v6860_v28 }
 0x451   :  { %v8786_v29 = vpop.f32.mrb[80].mxu1  ;;  %v8788_v32 = vpop.f32.mrb[114].mxu0  ;;  %4940 = vmatmul.mubr.f32.vlgmr.msra.gmra.mrb[126].mxu1 %v8685_v55 }
 0x452   :  { %v8791_v57 = vpop.f32.mrb[81].mxu1  ;;  %v8793_v60 = vpop.f32.mrb[115].mxu0  ;;  %6863 = vmatpush1.bf16.msra.mxu1 %v6862_v50  ;;  %5010 = vmatprep.mubr.f32.mxu1 %v4870_v53 }
 0x453   :  { %v6962_v63 = vpack.c.bf16 %v8786_v29, %v8791_v57  ;;  %v6966_v49 = vpack.c.bf16 %v8788_v32, %v8793_v60  ;;  %6865 = vmatprep.subr.bf16.mxu1 %v6864_v58 }
 0x455   :  { %v8799_v40 = vpop.f32.mrb[116].mxu0 }
 0x456   :  { %v8801_v61 = vpop.f32.mrb[117].mxu0  ;;  %6867 = vmatpush1.bf16.msra.mxu1 %v6866_v37 }
 0x457   :  { %v3645_v62 = vpop.f32.mrb[82].mxu1  ;;  %v6970_v55 = vpack.c.bf16 %v8799_v40, %v8801_v61 }
 0x458   :  { %v3647_v2 = vpop.f32.mrb[83].mxu1 }
 0x45b   :  { %v3651_v3 = vpop.f32.mrb[84].mxu1  ;;  %v3828_v4 = vpop.f32.mrb[118].mxu0 }
 0x45c   :  { %v6870_v42 = vpack.c.bf16 %v3651_v3, %v3645_v62  ;;  %v3653_v0 = vpop.f32.mrb[85].mxu1  ;;  %v3830_v1 = vpop.f32.mrb[119].mxu0 }
 0x45d   :  { %v6868_v5 = vpack.c.bf16 %v3653_v0, %v3647_v2 }
 0x45f   :  { %v3657_v6 = vpop.f32.mrb[86].mxu1  ;;  %v3834_v7 = vpop.f32.mrb[120].mxu0  ;;  %6869 = vmatprep.subr.bf16.mxu1 %v6868_v5 }
 0x460   :  { %v6878_v8 = vpack.c.bf16 %v3834_v7, %v3828_v4  ;;  %v3659_v9 = vpop.f32.mrb[87].mxu1  ;;  %v3836_v10 = vpop.f32.mrb[121].mxu0  ;;  %6871 = vmatpush1.bf16.msra.mxu1 %v6870_v42 }
 0x461   :  { %v6876_v11 = vpack.c.bf16 %v3836_v10, %v3830_v1 }
 0x463   :  { %v3663_v12 = vpop.f32.mrb[88].mxu1  ;;  %v3840_v13 = vpop.f32.mrb[122].mxu0 }
 0x464   :  { %v6874_v14 = vpack.c.bf16 %v3663_v12, %v3657_v6  ;;  %v3665_v15 = vpop.f32.mrb[89].mxu1  ;;  %v3842_v16 = vpop.f32.mrb[123].mxu0 }
 0x465   :  { %v6872_v23 = vpack.c.bf16 %v3665_v15, %v3659_v9 }
 0x467   :  { %v3846_v25 = vpop.f32.mrb[124].mxu0  ;;  %v8805_v17 = vpop.f32.mrb[90].mxu1  ;;  %6873 = vmatprep.subr.bf16.mxu1 %v6872_v23 }
 0x468   :  { %v6882_v18 = vpack.c.bf16 %v3846_v25, %v3840_v13  ;;  %v3848_v19 = vpop.f32.mrb[125].mxu0  ;;  %v8807_v20 = vpop.f32.mrb[91].mxu1  ;;  %6875 = vmatpush1.bf16.msra.mxu1 %v6874_v14 }
 0x469   :  { %v6880_v21 = vpack.c.bf16 %v3848_v19, %v3842_v16  ;;  %v6974_v22 = vpack.c.bf16 %v8805_v17, %v8807_v20  ;;  %6877 = vmatprep.subr.bf16.mxu1 %v6876_v11 }
 0x46b   :  { %v8811_v38 = vpop.f32.mrb[92].mxu1  ;;  %v8813_v41 = vpop.f32.mrb[126].mxu0 }
 0x46c   :  { %v8815_v24 = vpop.f32.mrb[93].mxu1  ;;  %v8817_v43 = vpop.f32.mrb[127].mxu0  ;;  %6879 = vmatpush1.bf16.msra.mxu1 %v6878_v8 }
 0x46d   :  { %v6978_v45 = vpack.c.bf16 %v8811_v38, %v8815_v24  ;;  %v6982_v46 = vpack.c.bf16 %v8813_v41, %v8817_v43  ;;  %6881 = vmatprep.subr.bf16.mxu1 %v6880_v21 }
 0x46f   :  { %v8823_v53 = vpop.f32.mrb[128].mxu0 }
 0x470   :  { %v8825_v26 = vpop.f32.mrb[129].mxu0  ;;  %6883 = vmatpush1.bf16.msra.mxu1 %v6882_v18 }
 0x471   :  { %v4011_v44 = vpop.f32.mrb[94].mxu1  ;;  %v6986_v50 = vpack.c.bf16 %v8823_v53, %v8825_v26 }
 0x472   :  { %v4013_v47 = vpop.f32.mrb[95].mxu1 }
 0x475   :  { %v4017_v27 = vpop.f32.mrb[96].mxu1  ;;  %v4194_v28 = vpop.f32.mrb[130].mxu0 }
 0x476   :  { %v6886_v30 = vpack.c.bf16 %v4017_v27, %v4011_v44  ;;  %v4019_v31 = vpop.f32.mrb[97].mxu1  ;;  %v4196_v33 = vpop.f32.mrb[131].mxu0 }
 0x477   :  { %v6884_v34 = vpack.c.bf16 %v4019_v31, %v4013_v47 }
 0x479   :  { %v4023_v48 = vpop.f32.mrb[98].mxu1  ;;  %v4200_v51 = vpop.f32.mrb[132].mxu0  ;;  %6885 = vmatprep.subr.bf16.mxu1 %v6884_v34 }
 0x47a   :  { %v6894_v56 = vpack.c.bf16 %v4200_v51, %v4194_v28  ;;  %v4025_v37 = vpop.f32.mrb[99].mxu1  ;;  %v4202_v39 = vpop.f32.mrb[133].mxu0  ;;  %6887 = vmatpush1.bf16.msra.mxu1 %v6886_v30 }
 0x47b   :  { %v6892_v58 = vpack.c.bf16 %v4202_v39, %v4196_v33 }
 0x47d   :  { %v4029_v62 = vpop.f32.mrb[100].mxu1  ;;  %v4206_v2 = vpop.f32.mrb[134].mxu0 }
 0x47e   :  { %v6890_v3 = vpack.c.bf16 %v4029_v62, %v4023_v48  ;;  %v4031_v4 = vpop.f32.mrb[101].mxu1  ;;  %v4208_v42 = vpop.f32.mrb[135].mxu0 }
 0x47f   :  { %v6888_v0 = vpack.c.bf16 %v4031_v4, %v4025_v37 }
 0x481   :  { %v4212_v1 = vpop.f32.mrb[136].mxu0  ;;  %v6376_v5 = vpop.f32.mrb[102].mxu1  ;;  %6889 = vmatprep.subr.bf16.mxu1 %v6888_v0 }
 0x482   :  { %v6898_v6 = vpack.c.bf16 %v4212_v1, %v4206_v2  ;;  %v4214_v7 = vpop.f32.mrb[137].mxu0  ;;  %v4283_v8 = vpop.f32.mrb[103].mxu1  ;;  %6891 = vmatpush1.bf16.msra.mxu1 %v6890_v3 }
 0x483   :  { %v6896_v9 = vpack.c.bf16 %v4214_v7, %v4208_v42  ;;  %v6956_v10 = vpack.c.bf16 %v6376_v5, %v4283_v8  ;;  %6893 = vmatprep.subr.bf16.mxu1 %v6892_v58 }
 0x485   :  { %v6379_v11 = vpop.f32.mrb[104].mxu1  ;;  %v6392_v12 = vpop.f32.mrb[138].mxu0  ;;  %6957 = vmatprep.subr.bf16.mxu0 %v6956_v10 }
 0x486   :  { %v4293_v13 = vpop.f32.mrb[105].mxu1  ;;  %v4466_v14 = vpop.f32.mrb[139].mxu0  ;;  %6895 = vmatpush1.bf16.msra.mxu1 %v6894_v56  ;;  %6959 = vmatpush3.bf16.msra.mxu0 %v6958_v59 }
 0x487   :  { %v6960_v15 = vpack.c.bf16 %v6379_v11, %v4293_v13  ;;  %v6964_v16 = vpack.c.bf16 %v6392_v12, %v4466_v14  ;;  %6897 = vmatprep.subr.bf16.mxu1 %v6896_v9 }
 0x489   :  { %v6395_v23 = vpop.f32.mrb[140].mxu0  ;;  %6961 = vmatprep.subr.bf16.mxu0 %v6960_v15 }
 0x48a   :  { %v4476_v25 = vpop.f32.mrb[141].mxu0  ;;  %6899 = vmatpush1.bf16.msra.mxu1 %v6898_v6  ;;  %6963 = vmatpush3.bf16.msra.mxu0 %v6962_v63 }
 0x48b   :  { %v4377_v18 = vpop.f32.mrb[106].mxu1  ;;  %v6968_v19 = vpack.c.bf16 %v6395_v23, %v4476_v25  ;;  %6965 = vmatprep.subr.bf16.mxu0 %v6964_v16 }
 0x48c   :  { %v4379_v21 = vpop.f32.mrb[107].mxu1 }
 0x48e   :  { %6967 = vmatpush3.bf16.msra.mxu0 %v6966_v49 }
 0x48f   :  { %v4383_v36 = vpop.f32.mrb[108].mxu1  ;;  %v4560_v52 = vpop.f32.mrb[142].mxu0  ;;  %6969 = vmatprep.subr.bf16.mxu0 %v6968_v19 }
 0x490   :  { %v6902_v59 = vpack.c.bf16 %v4383_v36, %v4377_v18  ;;  %v4385_v44 = vpop.f32.mrb[109].mxu1  ;;  %v4562_v47 = vpop.f32.mrb[143].mxu0 }
 0x491   :  { %v6900_v27 = vpack.c.bf16 %v4385_v44, %v4379_v21 }
 0x492   :  { %6971 = vmatpush3.bf16.msra.mxu0 %v6970_v55 }
 0x493   :  { %v4389_v29 = vpop.f32.mrb[110].mxu1  ;;  %v4566_v57 = vpop.f32.mrb[144].mxu0  ;;  %6901 = vmatprep.subr.bf16.mxu1 %v6900_v27 }
 0x494   :  { %v6910_v63 = vpack.c.bf16 %v4566_v57, %v4560_v52  ;;  %v4391_v28 = vpop.f32.mrb[111].mxu1  ;;  %v4568_v30 = vpop.f32.mrb[145].mxu0  ;;  %6903 = vmatpush1.bf16.msra.mxu1 %v6902_v59 }
 0x495   :  { %v6908_v32 = vpack.c.bf16 %v4568_v30, %v4562_v47 }
 0x497   :  { %v4395_v60 = vpop.f32.mrb[112].mxu1  ;;  %v4572_v49 = vpop.f32.mrb[146].mxu0 }
 0x498   :  { %v6906_v31 = vpack.c.bf16 %v4395_v60, %v4389_v29  ;;  %v4397_v33 = vpop.f32.mrb[113].mxu1  ;;  %v4574_v34 = vpop.f32.mrb[147].mxu0 }
 0x499   :  { %v6904_v48 = vpack.c.bf16 %v4397_v33, %v4391_v28 }
 0x49b   :  { %v4578_v51 = vpop.f32.mrb[148].mxu0  ;;  %v6408_v56 = vpop.f32.mrb[114].mxu1  ;;  %6905 = vmatprep.subr.bf16.mxu1 %v6904_v48 }
 0x49c   :  { %v6914_v37 = vpack.c.bf16 %v4578_v51, %v4572_v49  ;;  %v4580_v40 = vpop.f32.mrb[149].mxu0  ;;  %v4649_v61 = vpop.f32.mrb[115].mxu1  ;;  %6907 = vmatpush1.bf16.msra.mxu1 %v6906_v31 }
 0x49d   :  { %v6912_v55 = vpack.c.bf16 %v4580_v40, %v4574_v34  ;;  %v6972_v39 = vpack.c.bf16 %v6408_v56, %v4649_v61  ;;  %6909 = vmatprep.subr.bf16.mxu1 %v6908_v32 }
 0x49f   :  { %v6411_v58 = vpop.f32.mrb[116].mxu1  ;;  %v6424_v62 = vpop.f32.mrb[150].mxu0  ;;  %6973 = vmatprep.subr.bf16.mxu0 %v6972_v39 }
 0x4a0   :  { %v4659_v2 = vpop.f32.mrb[117].mxu1  ;;  %v4832_v3 = vpop.f32.mrb[151].mxu0  ;;  %6911 = vmatpush1.bf16.msra.mxu1 %v6910_v63  ;;  %6975 = vmatpush3.bf16.msra.mxu0 %v6974_v22 }
 0x4a1   :  { %v6976_v4 = vpack.c.bf16 %v6411_v58, %v4659_v2  ;;  %v6980_v42 = vpack.c.bf16 %v6424_v62, %v4832_v3  ;;  %6913 = vmatprep.subr.bf16.mxu1 %v6912_v55 }
 0x4a3   :  { %v6427_v0 = vpop.f32.mrb[152].mxu0  ;;  %6977 = vmatprep.subr.bf16.mxu0 %v6976_v4 }
 0x4a4   :  { %v4842_v1 = vpop.f32.mrb[153].mxu0  ;;  %6915 = vmatpush1.bf16.msra.mxu1 %v6914_v37  ;;  %6979 = vmatpush3.bf16.msra.mxu0 %v6978_v45 }
 0x4a5   :  { %v4743_v5 = vpop.f32.mrb[118].mxu1  ;;  %v6984_v6 = vpack.c.bf16 %v6427_v0, %v4842_v1  ;;  %6981 = vmatprep.subr.bf16.mxu0 %v6980_v42 }
 0x4a6   :  { %v4745_v7 = vpop.f32.mrb[119].mxu1 }
 0x4a8   :  { %6983 = vmatpush3.bf16.msra.mxu0 %v6982_v46 }
 0x4a9   :  { %v4749_v17 = vpop.f32.mrb[120].mxu1  ;;  %6985 = vmatprep.subr.bf16.mxu0 %v6984_v6 }
 0x4aa   :  { %v6918_v20 = vpack.c.bf16 %v4749_v17, %v4743_v5  ;;  %v4751_v22 = vpop.f32.mrb[121].mxu1 }
 0x4ab   :  { %v6916_v8 = vpack.c.bf16 %v4751_v22, %v4745_v7 }
 0x4ac   :  { %6987 = vmatpush3.bf16.msra.mxu0 %v6986_v50 }
 0x4ad   :  { %v4755_v9 = vpop.f32.mrb[122].mxu1  ;;  %6917 = vmatprep.subr.bf16.mxu1 %v6916_v8 }
 0x4ae   :  { %v4757_v38 = vpop.f32.mrb[123].mxu1  ;;  %6919 = vmatpush1.bf16.msra.mxu1 %v6918_v20 }
 0x4af   :  { %5152 = vmatmul.mubr.f32.vlgmr.msra.gmra.mrb[156].mxu0 %v8772_v35 }
 0x4b1   :  { %v4761_v24 = vpop.f32.mrb[124].mxu1 }
 0x4b2   :  { %v6922_v45 = vpack.c.bf16 %v4761_v24, %v4755_v9  ;;  %v4763_v10 = vpop.f32.mrb[125].mxu1 }
 0x4b3   :  { %v6920_v41 = vpack.c.bf16 %v4763_v10, %v4757_v38 }
 0x4b5   :  { %6921 = vmatprep.subr.bf16.mxu1 %v6920_v41 }
 0x4b6   :  { %6923 = vmatpush1.bf16.msra.mxu1 %v6922_v45 }
 0x4b9   :  { %5011 = vmatmul.mubr.f32.vlgmr.msra.gmra.mrb[126].mxu1 %v8772_v35 }
 0x51a   :  { %v5870_v43 = vpop.f32.mrb[154].mxu0 }
 0x51b   :  { %v5871_v46 = vpop.f32.mrb[155].mxu0 }
 0x51c   :  { %v5872_v11 = vadd.f32 %v5871_v46, %v5870_v43 }
 0x582   :  { %v5905_v12 = vpop.f32.mrb[156].mxu0 }
 0x583   :  { %v5906_v53 = vpop.f32.mrb[157].mxu0 }
 0x584   :  { %v5907_v26 = vadd.f32 %v5906_v53, %v5905_v12 }
 0x586   :  { %v5154_v50 = vadd.f32 %v5907_v26, %v5872_v11 }
 0x588   :  { %v5174_v16 = vrot.slane %v5154_v50, %v8678_v54 }
 0x58c   :  { %v5012_v13 = vpop.f32.mrb[126].mxu1 }
 0x58d   :  { %v5014_v14 = vpop.f32.mrb[127].mxu1 }
 0x58e   :  { %v5160_v15 = vcombine.low %v5012_v13, %v5014_v14 }
 0x590   :  { %v5167_v35 = vrot.slane %v5160_v15, %v8678_v54 }
 0x592   :  { %v5175_v23 = vcombine.low %v5167_v35, %v5174_v16 }
 0x594   :  { %5182 = vst.msk [vmem:[#allocation2] sm:$0x3f] %vm5181_vm8, %v5175_v23 }
 0x595   :  { %7052 = shalt.err (!%p7049_p4)
}
 0x596   :  { %s7053_s14 = scalar_lea.hbm %s8875_s6, 96 }
 0x597   :  { %p7054_p5 = scmp.ne.s32.totalorder %s8875_s6, %s7053_s14  ;;  %p7057_p6 = scmp.lt.u32.totalorder %s7053_s14, %s8875_s6 }
 0x599   :  { %p7059_p7 = pnand %p7057_p6, %p7054_p5 }
 0x59b   :  { %7062 = shalt.err (!%p7059_p7)
}
 0x59c   :  { %5192 = dma.vmem_to_hbm [thread:$0]  %s5190_s5, 96, %s8875_s6, [#allocation3]  }
 0x59d   :  { %7063 = dma.done.wait [#allocation3], 96  }
 0x59e   :  { %7064 = vsyncadd [#allocation3], 4294967200 }
 0x59f   :  { %5196 = vsyncpa [#allocation3], 1 }

</bundles_post_ra>
